<compile_context>
chip_gen: v5e
topology: v5e:2x2
jax: 0.10.0
libtpu: 0.0.40
codegen_flags: <defaults>
</compile_context>

<pallas_src>
import jax
import jax.numpy as jnp
from jax.experimental import pallas as pl
from jax.experimental.pallas import tpu as pltpu


# Set to jnp.bfloat16 on v6e/v7x to halve activation/weight traffic and hit the
# fast MXU path (accumulation stays f32).  Kept f32 here so the correctness
# check against the f32 reference is exact.
MXU_DTYPE = jnp.float32


# ---------------------------------------------------------------------------
# Tile-size helpers (always return sizes satisfying the (8,128)/full-dim rule)
# ---------------------------------------------------------------------------
def _pick_row_tile(ho, wo, target_rows=1024):
    """Largest divisor th of ho with th*wo a multiple of 8 (or th == ho)."""
    cap = max(1, min(ho, target_rows // max(wo, 1)))
    for th in range(cap, 0, -1):
        if ho % th == 0 and (th == ho or (th * wo) % 8 == 0):
            return th
    return ho


def _pick_tile(n, cap=1024):
    """Largest divisor of n <= cap that is a multiple of 8 (or n itself)."""
    cap = max(1, min(n, cap))
    for d in range(cap, 0, -1):
        if n % d == 0 and (d == n or d % 8 == 0):
            return d
    return n


# ---------------------------------------------------------------------------
# Stage 1: 3x3 stride-2 conv (+ bias, + partial BN statistics)
# ---------------------------------------------------------------------------
# Tap plan: (polyphase source index, row offset, col offset, weight tap 3*dy+dx)
_TAPS_S2 = [((dy % 2) * 2 + (dx % 2), dy // 2, dx // 2, 3 * dy + dx)
            for dy in range(3) for dx in range(3)]


def _make_conv_s2_kernel(th, wo, cout):
    rows = th * wo

    def kernel(*refs):
        src_refs = refs[:4]          # 4 polyphase components (full, VMEM-resident)
        w_ref = refs[4]              # (9, Cin, Cout)
        b_ref = refs[5]              # (1, Cout)
        y_ref = refs[6]              # (th*wo, Cout)
        stats_ref = refs[7]          # (2, Cout) partial sum / sum_sq

        rb = pl.program_id(1)
        r0 = rb * th

        acc = jnp.zeros((rows, cout), jnp.float32)
        for (s_idx, dy, dx, t) in _TAPS_S2:          # 9 shifted matmuls
            x = src_refs[s_idx][pl.ds(r0 + dy, th), pl.ds(dx, wo), :]
            acc = acc + jnp.dot(x.reshape(rows, x.shape[-1]), w_ref[t],
                                preferred_element_type=jnp.float32)

        y = acc + b_ref[...].astype(jnp.float32)
        y_ref[...] = y.astype(y_ref.dtype)
        s0 = jnp.sum(y, axis=0, keepdims=True)
        s1 = jnp.sum(y * y, axis=0, keepdims=True)
        stats_ref[...] = jnp.concatenate([s0, s1], axis=0)

    return kernel


def conv3x3_s2(x_nhwc, w9, b):
    """3x3 stride-2 conv + bias.

    Returns:
      y:     (N, Ho*Wo, Cout)   conv + bias output (f32)
      stats: (N, n_rb, 2, Cout) per-tile partial (sum, sum_sq) for BN
      ho, wo
    """
    n, h, w, _ = x_nhwc.shape
    ho = (h - 1) // 2 + 1
    wo = (w - 1) // 2 + 1
    cout = w9.shape[-1]

    xp = jnp.pad(x_nhwc.astype(MXU_DTYPE), ((0, 0), (1, 1), (1, 1), (0, 0)))
    if (h + 2) % 2:
        xp = jnp.pad(xp, ((0, 0), (0, 1), (0, 0), (0, 0)))
    if (w + 2) % 2:
        xp = jnp.pad(xp, ((0, 0), (0, 0), (0, 1), (0, 0)))
    # Polyphase split (even/odd rows x cols): stride-2 conv -> unit-stride taps.
    srcs = [xp[:, 0::2, 0::2, :], xp[:, 0::2, 1::2, :],
            xp[:, 1::2, 0::2, :], xp[:, 1::2, 1::2, :]]

    th = _pick_row_tile(ho, wo)
    n_rb = ho // th

    in_specs = []
    for s in srcs:
        _, hs, ws, cin = s.shape
        # Full (half-res) image per batch element; re-used across row blocks.
        in_specs.append(pl.BlockSpec((None, hs, ws, cin),
                                     lambda i, j: (i, 0, 0, 0)))
    in_specs.append(pl.BlockSpec(w9.shape, lambda i, j: (0, 0, 0)))
    in_specs.append(pl.BlockSpec((1, cout), lambda i, j: (0, 0)))

    out_shape = (
        jax.ShapeDtypeStruct((n, ho * wo, cout), jnp.float32),
        jax.ShapeDtypeStruct((n, n_rb, 2, cout), jnp.float32),
    )
    out_specs = (
        pl.BlockSpec((None, th * wo, cout), lambda i, j: (i, j, 0)),
        pl.BlockSpec((None, None, 2, cout), lambda i, j: (i, j, 0, 0)),
    )

    y, stats = pl.pallas_call(
        _make_conv_s2_kernel(th, wo, cout),
        grid=(n, n_rb),
        in_specs=in_specs,
        out_specs=out_specs,
        out_shape=out_shape,
        compiler_params=pltpu.CompilerParams(
            dimension_semantics=("parallel", "parallel")),
    )(*srcs, w9.astype(MXU_DTYPE), b.reshape(1, cout))
    return y, stats, ho, wo


# ---------------------------------------------------------------------------
# Stage 2: fused [BN1-apply + LeakyReLU] -> 3x3 stride-1 conv (+ bias, + stats)
# ---------------------------------------------------------------------------
def _make_conv_s1_bn_kernel(th, wo, cin, cout):
    rows = th * wo

    def kernel(x_ref, m_ref, sc_ref, sh_ref, w_ref, b_ref, y_ref, stats_ref):
        rb = pl.program_id(1)
        r0 = rb * th
        scale = sc_ref[...]                          # (1, 1, Cin)
        shift = sh_ref[...]

        acc = jnp.zeros((rows, cout), jnp.float32)
        for dy in range(3):
            for dx in range(3):
                x = x_ref[pl.ds(r0 + dy, th), pl.ds(dx, wo), :].astype(jnp.float32)
                m = m_ref[pl.ds(r0 + dy, th), pl.ds(dx, wo), :]     # (th, wo, 1)
                z = x * scale + shift                 # stage-1 BN (affine)
                z = jnp.where(z >= 0.0, z, 0.2 * z) * m   # LeakyReLU + zero-pad
                acc = acc + jnp.dot(z.reshape(rows, cin).astype(MXU_DTYPE),
                                    w_ref[3 * dy + dx],
                                    preferred_element_type=jnp.float32)

        y = acc + b_ref[...].astype(jnp.float32)
        y_ref[...] = y.astype(y_ref.dtype)
        s0 = jnp.sum(y, axis=0, keepdims=True)
        s1 = jnp.sum(y * y, axis=0, keepdims=True)
        stats_ref[...] = jnp.concatenate([s0, s1], axis=0)

    return kernel


def conv3x3_s1_fused_bn(y1_nhwc, scale1, shift1, w9, b):
    """BN1-apply + LeakyReLU(0.2) fused into a 3x3 stride-1 conv + bias.

    y1_nhwc is the *pre-BN* conv1 output; the padded border is kept exactly
    zero via a precomputed mask so the result matches zero-padding the
    activated tensor.
    """
    n, h, w, c = y1_nhwc.shape
    cout = w9.shape[-1]
    hp, wp = h + 2, w + 2

    xp = jnp.pad(y1_nhwc.astype(MXU_DTYPE), ((0, 0), (1, 1), (1, 1), (0, 0)))
    mask = jnp.pad(jnp.ones((h, w, 1), jnp.float32), ((1, 1), (1, 1), (0, 0)))

    th = _pick_row_tile(h, w)
    n_rb = h // th

    in_specs = [
        pl.BlockSpec((None, hp, wp, c), lambda i, j: (i, 0, 0, 0)),
        pl.BlockSpec((hp, wp, 1), lambda i, j: (0, 0, 0)),
        pl.BlockSpec((1, 1, c), lambda i, j: (0, 0, 0)),
        pl.BlockSpec((1, 1, c), lambda i, j: (0, 0, 0)),
        pl.BlockSpec(w9.shape, lambda i, j: (0, 0, 0)),
        pl.BlockSpec((1, cout), lambda i, j: (0, 0)),
    ]
    out_shape = (
        jax.ShapeDtypeStruct((n, h * w, cout), jnp.float32),
        jax.ShapeDtypeStruct((n, n_rb, 2, cout), jnp.float32),
    )
    out_specs = (
        pl.BlockSpec((None, th * w, cout), lambda i, j: (i, j, 0)),
        pl.BlockSpec((None, None, 2, cout), lambda i, j: (i, j, 0, 0)),
    )

    y, stats = pl.pallas_call(
        _make_conv_s1_bn_kernel(th, w, c, cout),
        grid=(n, n_rb),
        in_specs=in_specs,
        out_specs=out_specs,
        out_shape=out_shape,
        compiler_params=pltpu.CompilerParams(
            dimension_semantics=("parallel", "parallel")),
    )(xp, mask,
      scale1.reshape(1, 1, c).astype(jnp.float32),
      shift1.reshape(1, 1, c).astype(jnp.float32),
      w9.astype(MXU_DTYPE), b.reshape(1, cout))
    return y, stats


# ---------------------------------------------------------------------------
# BatchNorm (training-mode batch stats) apply + LeakyReLU(0.2), tiled
# ---------------------------------------------------------------------------
def _bn_scale_shift(stats, gamma, beta, count, eps=1e-5):
    c = stats.shape[-1]
    s = jnp.sum(stats.reshape(-1, 2, c), axis=0)          # (2, C)
    mean = s[0] / count
    var = jnp.maximum(s[1] / count - mean * mean, 0.0)    # biased variance
    scale = gamma * jax.lax.rsqrt(var + eps)
    shift = beta - mean * scale
    return scale, shift


def _bn_lrelu_kernel(y_ref, scale_ref, shift_ref, o_ref):
    z = y_ref[...].astype(jnp.float32) * scale_ref[...] + shift_ref[...]
    o_ref[...] = jnp.where(z >= 0.0, z, 0.2 * z).astype(o_ref.dtype)


def bn_apply_lrelu(y_flat, scale, shift):
    """y_flat: (M, C) -> (M, C).  Tiled; pixels folded into lanes when C<128."""
    m, c = y_flat.shape
    k = 1
    if c < 128:
        k = max(1, 128 // c)
        while m % k:
            k -= 1
    mf, cf = m // k, c * k
    yf = y_flat.reshape(mf, cf)                     # free, contiguous reshape
    scale_f = jnp.tile(scale, k).reshape(1, cf).astype(jnp.float32)
    shift_f = jnp.tile(shift, k).reshape(1, cf).astype(jnp.float32)

    tm = _pick_tile(mf, 1024)
    out = pl.pallas_call(
        _bn_lrelu_kernel,
        grid=(mf // tm,),
        in_specs=[pl.BlockSpec((tm, cf), lambda i: (i, 0)),
                  pl.BlockSpec((1, cf), lambda i: (0, 0)),
                  pl.BlockSpec((1, cf), lambda i: (0, 0))],
        out_specs=pl.BlockSpec((tm, cf), lambda i: (i, 0)),
        out_shape=jax.ShapeDtypeStruct((mf, cf), jnp.float32),
        compiler_params=pltpu.CompilerParams(dimension_semantics=("parallel",)),
    )(yf, scale_f, shift_f)
    return out.reshape(m, c)


# ---------------------------------------------------------------------------
# Full forward pass
# ---------------------------------------------------------------------------
def pack_params(params):
    """One-time repack (outside jit): conv weight (Cout,Cin,3,3) -> (9,Cin,Cout)."""
    def w9(w):
        return jnp.transpose(w, (2, 3, 1, 0)).reshape(9, w.shape[1], w.shape[0])
    return {"w1": w9(params["w1"]), "b1": params["b1"],
            "g1": params["g1"], "be1": params["be1"],
            "w2": w9(params["w2"]), "b2": params["b2"],
            "g2": params["g2"], "be2": params["be2"]}


@jax.jit
def convolutional_block_forward(x_nchw, packed):
    # NCHW -> NHWC (channels on the 128-lane axis).
    x = jnp.transpose(x_nchw, (0, 2, 3, 1)).astype(jnp.float32)
    n, h, w, c = x.shape

    # --- stage 1: conv(3x3, stride 2) + bias + per-tile BN stats
    y1, st1, h1, w1 = conv3x3_s2(x, packed["w1"], packed["b1"])
    sc1, sh1 = _bn_scale_shift(st1, packed["g1"], packed["be1"], n * h1 * w1)

    # --- stage 2: BN1-apply + LeakyReLU fused into conv(3x3, s1, 2C out);
    #     kernel also emits BN2 partial stats.
    c2 = packed["w2"].shape[-1]
    y2, st2 = conv3x3_s1_fused_bn(y1.reshape(n, h1, w1, c), sc1, sh1,
                                  packed["w2"], packed["b2"])
    sc2, sh2 = _bn_scale_shift(st2, packed["g2"], packed["be2"], n * h1 * w1)

    # --- final BN2-apply + LeakyReLU (tiled, lane-folded)
    a2 = bn_apply_lrelu(y2.reshape(n * h1 * w1, c2), sc2, sh2)
    return jnp.transpose(a2.reshape(n, h1, w1, c2), (0, 3, 1, 2))   # -> NCHW


# ---------------------------------------------------------------------------
# Pure-JAX reference (NCHW, same semantics) for a numerical sanity check
# ---------------------------------------------------------------------------
def reference_forward(x, params):
    def conv(x, w, b, stride):
        y = jax.lax.conv_general_dilated(
            x, w, (stride, stride), ((1, 1), (1, 1)),
            dimension_numbers=("NCHW", "OIHW", "NCHW"))
        return y + b[None, :, None, None]

    def bn_lrelu(y, g, be):
        mean = jnp.mean(y, axis=(0, 2, 3), keepdims=True)
        var = jnp.mean((y - mean) ** 2, axis=(0, 2, 3), keepdims=True)
        y = (y - mean) * jax.lax.rsqrt(var + 1e-5)
        y = y * g[None, :, None, None] + be[None, :, None, None]
        return jnp.where(y >= 0.0, y, 0.2 * y)

    y = bn_lrelu(conv(x, params["w1"], params["b1"], 2), params["g1"], params["be1"])
    y = bn_lrelu(conv(y, params["w2"], params["b2"], 1), params["g2"], params["be2"])
    return y


# ---------------------------------------------------------------------------
def init_params(key, channels):
    ks = jax.random.split(key, 8)
    c, c2 = channels, 2 * channels
    return {
        "w1": 0.1 * jax.random.normal(ks[0], (c, c, 3, 3), jnp.float32),
        "b1": 0.1 * jax.random.normal(ks[1], (c,), jnp.float32),
        "g1": 1.0 + 0.1 * jax.random.normal(ks[2], (c,), jnp.float32),
        "be1": 0.1 * jax.random.normal(ks[3], (c,), jnp.float32),
        "w2": 0.1 * jax.random.normal(ks[4], (c2, c, 3, 3), jnp.float32),
        "b2": 0.1 * jax.random.normal(ks[5], (c2,), jnp.float32),
        "g2": 1.0 + 0.1 * jax.random.normal(ks[6], (c2,), jnp.float32),
        "be2": 0.1 * jax.random.normal(ks[7], (c2,), jnp.float32),
    }


if __name__ == "__main__":
    key = jax.random.PRNGKey(0)
    k_x, k_p = jax.random.split(key)

    N, C, H, W = 2, 4, 16, 16
    x = jax.random.normal(k_x, (N, C, H, W), jnp.float32)
    params = init_params(k_p, C)
    packed = pack_params(params)

    out = convolutional_block_forward(x, packed)
    out = jax.block_until_ready(out)
    assert out.shape == (N, 2 * C, H // 2, W // 2), out.shape

    ref = jax.block_until_ready(reference_forward(x, params))
    assert jnp.allclose(out, ref, rtol=1e-4, atol=1e-4), (
        float(jnp.max(jnp.abs(out - ref))))

    print("KERNEL_OK")
</pallas_src>

<mosaic_0001>
module attributes {stable_mosaic.version = 11 : i64} {
  func.func @kernel(%arg0: i32, %arg1: i32, %arg2: memref<1x9x9x4xf32, #tpu.memory_space<vmem>>, %arg3: memref<1x9x9x4xf32, #tpu.memory_space<vmem>>, %arg4: memref<1x9x9x4xf32, #tpu.memory_space<vmem>>, %arg5: memref<1x9x9x4xf32, #tpu.memory_space<vmem>>, %arg6: memref<9x4x4xf32, #tpu.memory_space<vmem>>, %arg7: memref<1x4xf32, #tpu.memory_space<vmem>>, %arg8: memref<1x64x4xf32, #tpu.memory_space<vmem>>, %arg9: memref<1x1x2x4xf32, #tpu.memory_space<vmem>>) attributes {dimension_semantics = [#tpu.dimension_semantics<parallel>, #tpu.dimension_semantics<parallel>], iteration_bounds = array<i64: 2, 1>, scalar_prefetch = 0 : i64, scratch_operands = 0 : i64, tpu.core_type = #tpu.core_type<tc>, window_params = [{transform_indices = @transform_0, window_bounds = array<i64: 1, 9, 9, 4>}, {transform_indices = @transform_1, window_bounds = array<i64: 1, 9, 9, 4>}, {transform_indices = @transform_2, window_bounds = array<i64: 1, 9, 9, 4>}, {transform_indices = @transform_3, window_bounds = array<i64: 1, 9, 9, 4>}, {pipeline_mode = #tpu.pipeline_mode<synchronous>, transform_indices = @transform_4, window_bounds = array<i64: 9, 4, 4>}, {pipeline_mode = #tpu.pipeline_mode<synchronous>, transform_indices = @transform_5, window_bounds = array<i64: 1, 4>}, {transform_indices = @transform_6, window_bounds = array<i64: 1, 64, 4>}, {transform_indices = @transform_7, window_bounds = array<i64: 1, 1, 2, 4>}]} {
    %c8_i32 = arith.constant 8 : i32
    %0 = arith.muli %arg1, %c8_i32 : i32
    %cst = arith.constant 0.000000e+00 : f32
    %1 = vector.broadcast %cst : f32 to vector<64x4xf32>
    %c0_i32 = arith.constant 0 : i32
    %2 = arith.addi %0, %c0_i32 : i32
    %c0 = arith.constant 0 : index
    %3 = arith.index_cast %2 : i32 to index
    %c0_0 = arith.constant 0 : index
    %c0_1 = arith.constant 0 : index
    %4 = vector.load %arg2[%c0, %3, %c0_0, %c0_1] : memref<1x9x9x4xf32, #tpu.memory_space<vmem>>, vector<1x8x8x4xf32>
    %5 = vector.shape_cast %4 : vector<1x8x8x4xf32> to vector<8x8x4xf32>
    %6 = vector.shape_cast %5 : vector<8x8x4xf32> to vector<64x4xf32>
    %c0_2 = arith.constant 0 : index
    %c0_3 = arith.constant 0 : index
    %c0_4 = arith.constant 0 : index
    %7 = vector.load %arg6[%c0_2, %c0_3, %c0_4] : memref<9x4x4xf32, #tpu.memory_space<vmem>>, vector<1x4x4xf32>
    %8 = vector.shape_cast %7 : vector<1x4x4xf32> to vector<4x4xf32>
    %cst_5 = arith.constant dense<0.000000e+00> : vector<64x4xf32>
    %9 = tpu.matmul %6, %8, %cst_5 {dimension_numbers = #tpu.dot_dimension_numbers<[1], [0], [0], [1], [0, 0, 1, 1], [], []>} : vector<64x4xf32>, vector<4x4xf32>, vector<64x4xf32> -> vector<64x4xf32>
    %10 = arith.addf %1, %9 : vector<64x4xf32>
    %c0_i32_6 = arith.constant 0 : i32
    %11 = arith.addi %0, %c0_i32_6 : i32
    %c0_7 = arith.constant 0 : index
    %12 = arith.index_cast %11 : i32 to index
    %c0_8 = arith.constant 0 : index
    %c0_9 = arith.constant 0 : index
    %13 = vector.load %arg3[%c0_7, %12, %c0_8, %c0_9] : memref<1x9x9x4xf32, #tpu.memory_space<vmem>>, vector<1x8x8x4xf32>
    %14 = vector.shape_cast %13 : vector<1x8x8x4xf32> to vector<8x8x4xf32>
    %15 = vector.shape_cast %14 : vector<8x8x4xf32> to vector<64x4xf32>
    %c1 = arith.constant 1 : index
    %c0_10 = arith.constant 0 : index
    %c0_11 = arith.constant 0 : index
    %16 = vector.load %arg6[%c1, %c0_10, %c0_11] : memref<9x4x4xf32, #tpu.memory_space<vmem>>, vector<1x4x4xf32>
    %17 = vector.shape_cast %16 : vector<1x4x4xf32> to vector<4x4xf32>
    %cst_12 = arith.constant dense<0.000000e+00> : vector<64x4xf32>
    %18 = tpu.matmul %15, %17, %cst_12 {dimension_numbers = #tpu.dot_dimension_numbers<[1], [0], [0], [1], [0, 0, 1, 1], [], []>} : vector<64x4xf32>, vector<4x4xf32>, vector<64x4xf32> -> vector<64x4xf32>
    %19 = arith.addf %10, %18 : vector<64x4xf32>
    %c0_i32_13 = arith.constant 0 : i32
    %20 = arith.addi %0, %c0_i32_13 : i32
    %c0_14 = arith.constant 0 : index
    %21 = arith.index_cast %20 : i32 to index
    %c1_15 = arith.constant 1 : index
    %c0_16 = arith.constant 0 : index
    %22 = vector.load %arg2[%c0_14, %21, %c1_15, %c0_16] : memref<1x9x9x4xf32, #tpu.memory_space<vmem>>, vector<1x8x8x4xf32>
    %23 = vector.shape_cast %22 : vector<1x8x8x4xf32> to vector<8x8x4xf32>
    %24 = vector.shape_cast %23 : vector<8x8x4xf32> to vector<64x4xf32>
    %c2 = arith.constant 2 : index
    %c0_17 = arith.constant 0 : index
    %c0_18 = arith.constant 0 : index
    %25 = vector.load %arg6[%c2, %c0_17, %c0_18] : memref<9x4x4xf32, #tpu.memory_space<vmem>>, vector<1x4x4xf32>
    %26 = vector.shape_cast %25 : vector<1x4x4xf32> to vector<4x4xf32>
    %cst_19 = arith.constant dense<0.000000e+00> : vector<64x4xf32>
    %27 = tpu.matmul %24, %26, %cst_19 {dimension_numbers = #tpu.dot_dimension_numbers<[1], [0], [0], [1], [0, 0, 1, 1], [], []>} : vector<64x4xf32>, vector<4x4xf32>, vector<64x4xf32> -> vector<64x4xf32>
    %28 = arith.addf %19, %27 : vector<64x4xf32>
    %c0_i32_20 = arith.constant 0 : i32
    %29 = arith.addi %0, %c0_i32_20 : i32
    %c0_21 = arith.constant 0 : index
    %30 = arith.index_cast %29 : i32 to index
    %c0_22 = arith.constant 0 : index
    %c0_23 = arith.constant 0 : index
    %31 = vector.load %arg4[%c0_21, %30, %c0_22, %c0_23] : memref<1x9x9x4xf32, #tpu.memory_space<vmem>>, vector<1x8x8x4xf32>
    %32 = vector.shape_cast %31 : vector<1x8x8x4xf32> to vector<8x8x4xf32>
    %33 = vector.shape_cast %32 : vector<8x8x4xf32> to vector<64x4xf32>
    %c3 = arith.constant 3 : index
    %c0_24 = arith.constant 0 : index
    %c0_25 = arith.constant 0 : index
    %34 = vector.load %arg6[%c3, %c0_24, %c0_25] : memref<9x4x4xf32, #tpu.memory_space<vmem>>, vector<1x4x4xf32>
    %35 = vector.shape_cast %34 : vector<1x4x4xf32> to vector<4x4xf32>
    %cst_26 = arith.constant dense<0.000000e+00> : vector<64x4xf32>
    %36 = tpu.matmul %33, %35, %cst_26 {dimension_numbers = #tpu.dot_dimension_numbers<[1], [0], [0], [1], [0, 0, 1, 1], [], []>} : vector<64x4xf32>, vector<4x4xf32>, vector<64x4xf32> -> vector<64x4xf32>
    %37 = arith.addf %28, %36 : vector<64x4xf32>
    %c0_i32_27 = arith.constant 0 : i32
    %38 = arith.addi %0, %c0_i32_27 : i32
    %c0_28 = arith.constant 0 : index
    %39 = arith.index_cast %38 : i32 to index
    %c0_29 = arith.constant 0 : index
    %c0_30 = arith.constant 0 : index
    %40 = vector.load %arg5[%c0_28, %39, %c0_29, %c0_30] : memref<1x9x9x4xf32, #tpu.memory_space<vmem>>, vector<1x8x8x4xf32>
    %41 = vector.shape_cast %40 : vector<1x8x8x4xf32> to vector<8x8x4xf32>
    %42 = vector.shape_cast %41 : vector<8x8x4xf32> to vector<64x4xf32>
    %c4 = arith.constant 4 : index
    %c0_31 = arith.constant 0 : index
    %c0_32 = arith.constant 0 : index
    %43 = vector.load %arg6[%c4, %c0_31, %c0_32] : memref<9x4x4xf32, #tpu.memory_space<vmem>>, vector<1x4x4xf32>
    %44 = vector.shape_cast %43 : vector<1x4x4xf32> to vector<4x4xf32>
    %cst_33 = arith.constant dense<0.000000e+00> : vector<64x4xf32>
    %45 = tpu.matmul %42, %44, %cst_33 {dimension_numbers = #tpu.dot_dimension_numbers<[1], [0], [0], [1], [0, 0, 1, 1], [], []>} : vector<64x4xf32>, vector<4x4xf32>, vector<64x4xf32> -> vector<64x4xf32>
    %46 = arith.addf %37, %45 : vector<64x4xf32>
    %c0_i32_34 = arith.constant 0 : i32
    %47 = arith.addi %0, %c0_i32_34 : i32
    %c0_35 = arith.constant 0 : index
    %48 = arith.index_cast %47 : i32 to index
    %c1_36 = arith.constant 1 : index
    %c0_37 = arith.constant 0 : index
    %49 = vector.load %arg4[%c0_35, %48, %c1_36, %c0_37] : memref<1x9x9x4xf32, #tpu.memory_space<vmem>>, vector<1x8x8x4xf32>
    %50 = vector.shape_cast %49 : vector<1x8x8x4xf32> to vector<8x8x4xf32>
    %51 = vector.shape_cast %50 : vector<8x8x4xf32> to vector<64x4xf32>
    %c5 = arith.constant 5 : index
    %c0_38 = arith.constant 0 : index
    %c0_39 = arith.constant 0 : index
    %52 = vector.load %arg6[%c5, %c0_38, %c0_39] : memref<9x4x4xf32, #tpu.memory_space<vmem>>, vector<1x4x4xf32>
    %53 = vector.shape_cast %52 : vector<1x4x4xf32> to vector<4x4xf32>
    %cst_40 = arith.constant dense<0.000000e+00> : vector<64x4xf32>
    %54 = tpu.matmul %51, %53, %cst_40 {dimension_numbers = #tpu.dot_dimension_numbers<[1], [0], [0], [1], [0, 0, 1, 1], [], []>} : vector<64x4xf32>, vector<4x4xf32>, vector<64x4xf32> -> vector<64x4xf32>
    %55 = arith.addf %46, %54 : vector<64x4xf32>
    %c1_i32 = arith.constant 1 : i32
    %56 = arith.addi %0, %c1_i32 : i32
    %c0_41 = arith.constant 0 : index
    %57 = arith.index_cast %56 : i32 to index
    %c0_42 = arith.constant 0 : index
    %c0_43 = arith.constant 0 : index
    %58 = vector.load %arg2[%c0_41, %57, %c0_42, %c0_43] : memref<1x9x9x4xf32, #tpu.memory_space<vmem>>, vector<1x8x8x4xf32>
    %59 = vector.shape_cast %58 : vector<1x8x8x4xf32> to vector<8x8x4xf32>
    %60 = vector.shape_cast %59 : vector<8x8x4xf32> to vector<64x4xf32>
    %c6 = arith.constant 6 : index
    %c0_44 = arith.constant 0 : index
    %c0_45 = arith.constant 0 : index
    %61 = vector.load %arg6[%c6, %c0_44, %c0_45] : memref<9x4x4xf32, #tpu.memory_space<vmem>>, vector<1x4x4xf32>
    %62 = vector.shape_cast %61 : vector<1x4x4xf32> to vector<4x4xf32>
    %cst_46 = arith.constant dense<0.000000e+00> : vector<64x4xf32>
    %63 = tpu.matmul %60, %62, %cst_46 {dimension_numbers = #tpu.dot_dimension_numbers<[1], [0], [0], [1], [0, 0, 1, 1], [], []>} : vector<64x4xf32>, vector<4x4xf32>, vector<64x4xf32> -> vector<64x4xf32>
    %64 = arith.addf %55, %63 : vector<64x4xf32>
    %c1_i32_47 = arith.constant 1 : i32
    %65 = arith.addi %0, %c1_i32_47 : i32
    %c0_48 = arith.constant 0 : index
    %66 = arith.index_cast %65 : i32 to index
    %c0_49 = arith.constant 0 : index
    %c0_50 = arith.constant 0 : index
    %67 = vector.load %arg3[%c0_48, %66, %c0_49, %c0_50] : memref<1x9x9x4xf32, #tpu.memory_space<vmem>>, vector<1x8x8x4xf32>
    %68 = vector.shape_cast %67 : vector<1x8x8x4xf32> to vector<8x8x4xf32>
    %69 = vector.shape_cast %68 : vector<8x8x4xf32> to vector<64x4xf32>
    %c7 = arith.constant 7 : index
    %c0_51 = arith.constant 0 : index
    %c0_52 = arith.constant 0 : index
    %70 = vector.load %arg6[%c7, %c0_51, %c0_52] : memref<9x4x4xf32, #tpu.memory_space<vmem>>, vector<1x4x4xf32>
    %71 = vector.shape_cast %70 : vector<1x4x4xf32> to vector<4x4xf32>
    %cst_53 = arith.constant dense<0.000000e+00> : vector<64x4xf32>
    %72 = tpu.matmul %69, %71, %cst_53 {dimension_numbers = #tpu.dot_dimension_numbers<[1], [0], [0], [1], [0, 0, 1, 1], [], []>} : vector<64x4xf32>, vector<4x4xf32>, vector<64x4xf32> -> vector<64x4xf32>
    %73 = arith.addf %64, %72 : vector<64x4xf32>
    %c1_i32_54 = arith.constant 1 : i32
    %74 = arith.addi %0, %c1_i32_54 : i32
    %c0_55 = arith.constant 0 : index
    %75 = arith.index_cast %74 : i32 to index
    %c1_56 = arith.constant 1 : index
    %c0_57 = arith.constant 0 : index
    %76 = vector.load %arg2[%c0_55, %75, %c1_56, %c0_57] : memref<1x9x9x4xf32, #tpu.memory_space<vmem>>, vector<1x8x8x4xf32>
    %77 = vector.shape_cast %76 : vector<1x8x8x4xf32> to vector<8x8x4xf32>
    %78 = vector.shape_cast %77 : vector<8x8x4xf32> to vector<64x4xf32>
    %c8 = arith.constant 8 : index
    %c0_58 = arith.constant 0 : index
    %c0_59 = arith.constant 0 : index
    %79 = vector.load %arg6[%c8, %c0_58, %c0_59] : memref<9x4x4xf32, #tpu.memory_space<vmem>>, vector<1x4x4xf32>
    %80 = vector.shape_cast %79 : vector<1x4x4xf32> to vector<4x4xf32>
    %cst_60 = arith.constant dense<0.000000e+00> : vector<64x4xf32>
    %81 = tpu.matmul %78, %80, %cst_60 {dimension_numbers = #tpu.dot_dimension_numbers<[1], [0], [0], [1], [0, 0, 1, 1], [], []>} : vector<64x4xf32>, vector<4x4xf32>, vector<64x4xf32> -> vector<64x4xf32>
    %82 = arith.addf %73, %81 : vector<64x4xf32>
    %c0_61 = arith.constant 0 : index
    %c0_62 = arith.constant 0 : index
    %83 = vector.load %arg7[%c0_61, %c0_62] : memref<1x4xf32, #tpu.memory_space<vmem>>, vector<1x4xf32>
    %84 = vector.broadcast %83 : vector<1x4xf32> to vector<64x4xf32>
    %85 = arith.addf %82, %84 : vector<64x4xf32>
    %c0_63 = arith.constant 0 : index
    %c0_64 = arith.constant 0 : index
    %c0_65 = arith.constant 0 : index
    %86 = vector.load %arg8[%c0_63, %c0_64, %c0_65] : memref<1x64x4xf32, #tpu.memory_space<vmem>>, vector<1x64x4xf32>
    %87 = vector.shape_cast %86 : vector<1x64x4xf32> to vector<64x4xf32>
    %88 = vector.shape_cast %85 : vector<64x4xf32> to vector<1x64x4xf32>
    tpu.vector_store %arg8[%c0_63, %c0_64, %c0_65], %88 {strides = array<i32>} : memref<1x64x4xf32, #tpu.memory_space<vmem>>, vector<1x64x4xf32>,
    %cst_66 = arith.constant dense<0.000000e+00> : vector<4xf32>
    %89 = vector.multi_reduction <add>, %85, %cst_66 [0] : vector<64x4xf32> to vector<4xf32>
    %90 = vector.shape_cast %89 : vector<4xf32> to vector<1x4xf32>
    %91 = arith.mulf %85, %85 : vector<64x4xf32>
    %cst_67 = arith.constant dense<0.000000e+00> : vector<4xf32>
    %92 = vector.multi_reduction <add>, %91, %cst_67 [0] : vector<64x4xf32> to vector<4xf32>
    %93 = vector.shape_cast %92 : vector<4xf32> to vector<1x4xf32>
    %94 = tpu.concatenate %90, %93 in 0 : vector<1x4xf32>, vector<1x4xf32> -> vector<2x4xf32>
    %c0_68 = arith.constant 0 : index
    %c0_69 = arith.constant 0 : index
    %c0_70 = arith.constant 0 : index
    %c0_71 = arith.constant 0 : index
    %95 = vector.load %arg9[%c0_68, %c0_69, %c0_70, %c0_71] : memref<1x1x2x4xf32, #tpu.memory_space<vmem>>, vector<1x1x2x4xf32>
    %96 = vector.shape_cast %95 : vector<1x1x2x4xf32> to vector<2x4xf32>
    %97 = vector.shape_cast %94 : vector<2x4xf32> to vector<1x1x2x4xf32>
    tpu.vector_store %arg9[%c0_68, %c0_69, %c0_70, %c0_71], %97 {strides = array<i32>} : memref<1x1x2x4xf32, #tpu.memory_space<vmem>>, vector<1x1x2x4xf32>,
    return
  }
  func.func @transform_0(%arg0: i32, %arg1: i32) -> (i32, i32, i32, i32) {
    %c0_i32 = arith.constant 0 : i32
    %c0_i32_0 = arith.constant 0 : i32
    %c0_i32_1 = arith.constant 0 : i32
    %c0_i32_2 = arith.constant 0 : i32
    return %arg0, %c0_i32, %c0_i32_0, %c0_i32_1 : i32, i32, i32, i32
  }
  func.func @transform_1(%arg0: i32, %arg1: i32) -> (i32, i32, i32, i32) {
    %c0_i32 = arith.constant 0 : i32
    %c0_i32_0 = arith.constant 0 : i32
    %c0_i32_1 = arith.constant 0 : i32
    %c0_i32_2 = arith.constant 0 : i32
    return %arg0, %c0_i32, %c0_i32_0, %c0_i32_1 : i32, i32, i32, i32
  }
  func.func @transform_2(%arg0: i32, %arg1: i32) -> (i32, i32, i32, i32) {
    %c0_i32 = arith.constant 0 : i32
    %c0_i32_0 = arith.constant 0 : i32
    %c0_i32_1 = arith.constant 0 : i32
    %c0_i32_2 = arith.constant 0 : i32
    return %arg0, %c0_i32, %c0_i32_0, %c0_i32_1 : i32, i32, i32, i32
  }
  func.func @transform_3(%arg0: i32, %arg1: i32) -> (i32, i32, i32, i32) {
    %c0_i32 = arith.constant 0 : i32
    %c0_i32_0 = arith.constant 0 : i32
    %c0_i32_1 = arith.constant 0 : i32
    %c0_i32_2 = arith.constant 0 : i32
    return %arg0, %c0_i32, %c0_i32_0, %c0_i32_1 : i32, i32, i32, i32
  }
  func.func @transform_4(%arg0: i32, %arg1: i32) -> (i32, i32, i32) {
    %c0_i32 = arith.constant 0 : i32
    %c0_i32_0 = arith.constant 0 : i32
    %c0_i32_1 = arith.constant 0 : i32
    %c0_i32_2 = arith.constant 0 : i32
    return %c0_i32, %c0_i32_0, %c0_i32_1 : i32, i32, i32
  }
  func.func @transform_5(%arg0: i32, %arg1: i32) -> (i32, i32) {
    %c0_i32 = arith.constant 0 : i32
    %c0_i32_0 = arith.constant 0 : i32
    %c0_i32_1 = arith.constant 0 : i32
    return %c0_i32, %c0_i32_0 : i32, i32
  }
  func.func @transform_6(%arg0: i32, %arg1: i32) -> (i32, i32, i32) {
    %c0_i32 = arith.constant 0 : i32
    %c0_i32_0 = arith.constant 0 : i32
    return %arg0, %arg1, %c0_i32 : i32, i32, i32
  }
  func.func @transform_7(%arg0: i32, %arg1: i32) -> (i32, i32, i32, i32) {
    %c0_i32 = arith.constant 0 : i32
    %c0_i32_0 = arith.constant 0 : i32
    %c0_i32_1 = arith.constant 0 : i32
    return %arg0, %arg1, %c0_i32, %c0_i32_0 : i32, i32, i32, i32
  }
}

module attributes {stable_mosaic.version = 11 : i64} {
  func.func @kernel(%arg0: i32, %arg1: i32, %arg2: memref<1x10x10x4xf32, #tpu.memory_space<vmem>>, %arg3: memref<10x10x1xf32, #tpu.memory_space<vmem>>, %arg4: memref<1x1x4xf32, #tpu.memory_space<vmem>>, %arg5: memref<1x1x4xf32, #tpu.memory_space<vmem>>, %arg6: memref<9x4x8xf32, #tpu.memory_space<vmem>>, %arg7: memref<1x8xf32, #tpu.memory_space<vmem>>, %arg8: memref<1x64x8xf32, #tpu.memory_space<vmem>>, %arg9: memref<1x1x2x8xf32, #tpu.memory_space<vmem>>) attributes {dimension_semantics = [#tpu.dimension_semantics<parallel>, #tpu.dimension_semantics<parallel>], iteration_bounds = array<i64: 2, 1>, scalar_prefetch = 0 : i64, scratch_operands = 0 : i64, tpu.core_type = #tpu.core_type<tc>, window_params = [{transform_indices = @transform_0, window_bounds = array<i64: 1, 10, 10, 4>}, {pipeline_mode = #tpu.pipeline_mode<synchronous>, transform_indices = @transform_1, window_bounds = array<i64: 10, 10, 1>}, {pipeline_mode = #tpu.pipeline_mode<synchronous>, transform_indices = @transform_2, window_bounds = array<i64: 1, 1, 4>}, {pipeline_mode = #tpu.pipeline_mode<synchronous>, transform_indices = @transform_3, window_bounds = array<i64: 1, 1, 4>}, {pipeline_mode = #tpu.pipeline_mode<synchronous>, transform_indices = @transform_4, window_bounds = array<i64: 9, 4, 8>}, {pipeline_mode = #tpu.pipeline_mode<synchronous>, transform_indices = @transform_5, window_bounds = array<i64: 1, 8>}, {transform_indices = @transform_6, window_bounds = array<i64: 1, 64, 8>}, {transform_indices = @transform_7, window_bounds = array<i64: 1, 1, 2, 8>}]} {
    %c8_i32 = arith.constant 8 : i32
    %0 = arith.muli %arg1, %c8_i32 : i32
    %c0 = arith.constant 0 : index
    %c0_0 = arith.constant 0 : index
    %c0_1 = arith.constant 0 : index
    %1 = vector.load %arg4[%c0, %c0_0, %c0_1] : memref<1x1x4xf32, #tpu.memory_space<vmem>>, vector<1x1x4xf32>
    %c0_2 = arith.constant 0 : index
    %c0_3 = arith.constant 0 : index
    %c0_4 = arith.constant 0 : index
    %2 = vector.load %arg5[%c0_2, %c0_3, %c0_4] : memref<1x1x4xf32, #tpu.memory_space<vmem>>, vector<1x1x4xf32>
    %cst = arith.constant 0.000000e+00 : f32
    %3 = vector.broadcast %cst : f32 to vector<64x8xf32>
    %c0_i32 = arith.constant 0 : i32
    %4 = arith.addi %0, %c0_i32 : i32
    %c0_5 = arith.constant 0 : index
    %5 = arith.index_cast %4 : i32 to index
    %c0_6 = arith.constant 0 : index
    %c0_7 = arith.constant 0 : index
    %6 = vector.load %arg2[%c0_5, %5, %c0_6, %c0_7] : memref<1x10x10x4xf32, #tpu.memory_space<vmem>>, vector<1x8x8x4xf32>
    %7 = vector.shape_cast %6 : vector<1x8x8x4xf32> to vector<8x8x4xf32>
    %c0_i32_8 = arith.constant 0 : i32
    %8 = arith.addi %0, %c0_i32_8 : i32
    %9 = arith.index_cast %8 : i32 to index
    %c0_9 = arith.constant 0 : index
    %c0_10 = arith.constant 0 : index
    %10 = vector.load %arg3[%9, %c0_9, %c0_10] : memref<10x10x1xf32, #tpu.memory_space<vmem>>, vector<8x8x1xf32>
    %11 = vector.broadcast %1 : vector<1x1x4xf32> to vector<8x8x4xf32>
    %12 = arith.mulf %7, %11 : vector<8x8x4xf32>
    %13 = vector.broadcast %2 : vector<1x1x4xf32> to vector<8x8x4xf32>
    %14 = arith.addf %12, %13 : vector<8x8x4xf32>
    %cst_11 = arith.constant 0.000000e+00 : f32
    %15 = vector.broadcast %cst_11 : f32 to vector<8x8x4xf32>
    %16 = arith.cmpf oge, %14, %15 : vector<8x8x4xf32>
    %cst_12 = arith.constant 2.000000e-01 : f32
    %17 = vector.broadcast %cst_12 : f32 to vector<8x8x4xf32>
    %18 = arith.mulf %17, %14 : vector<8x8x4xf32>
    %19 = arith.select %16, %14, %18 : vector<8x8x4xi1>, vector<8x8x4xf32>
    %20 = vector.broadcast %10 : vector<8x8x1xf32> to vector<8x8x4xf32>
    %21 = arith.mulf %19, %20 : vector<8x8x4xf32>
    %22 = vector.shape_cast %21 : vector<8x8x4xf32> to vector<64x4xf32>
    %c0_13 = arith.constant 0 : index
    %c0_14 = arith.constant 0 : index
    %c0_15 = arith.constant 0 : index
    %23 = vector.load %arg6[%c0_13, %c0_14, %c0_15] : memref<9x4x8xf32, #tpu.memory_space<vmem>>, vector<1x4x8xf32>
    %24 = vector.shape_cast %23 : vector<1x4x8xf32> to vector<4x8xf32>
    %cst_16 = arith.constant dense<0.000000e+00> : vector<64x8xf32>
    %25 = tpu.matmul %22, %24, %cst_16 {dimension_numbers = #tpu.dot_dimension_numbers<[1], [0], [0], [1], [0, 0, 1, 1], [], []>} : vector<64x4xf32>, vector<4x8xf32>, vector<64x8xf32> -> vector<64x8xf32>
    %26 = arith.addf %3, %25 : vector<64x8xf32>
    %c0_i32_17 = arith.constant 0 : i32
    %27 = arith.addi %0, %c0_i32_17 : i32
    %c0_18 = arith.constant 0 : index
    %28 = arith.index_cast %27 : i32 to index
    %c1 = arith.constant 1 : index
    %c0_19 = arith.constant 0 : index
    %29 = vector.load %arg2[%c0_18, %28, %c1, %c0_19] : memref<1x10x10x4xf32, #tpu.memory_space<vmem>>, vector<1x8x8x4xf32>
    %30 = vector.shape_cast %29 : vector<1x8x8x4xf32> to vector<8x8x4xf32>
    %c0_i32_20 = arith.constant 0 : i32
    %31 = arith.addi %0, %c0_i32_20 : i32
    %32 = arith.index_cast %31 : i32 to index
    %c1_21 = arith.constant 1 : index
    %c0_22 = arith.constant 0 : index
    %33 = vector.load %arg3[%32, %c1_21, %c0_22] : memref<10x10x1xf32, #tpu.memory_space<vmem>>, vector<8x8x1xf32>
    %34 = vector.broadcast %1 : vector<1x1x4xf32> to vector<8x8x4xf32>
    %35 = arith.mulf %30, %34 : vector<8x8x4xf32>
    %36 = vector.broadcast %2 : vector<1x1x4xf32> to vector<8x8x4xf32>
    %37 = arith.addf %35, %36 : vector<8x8x4xf32>
    %cst_23 = arith.constant 0.000000e+00 : f32
    %38 = vector.broadcast %cst_23 : f32 to vector<8x8x4xf32>
    %39 = arith.cmpf oge, %37, %38 : vector<8x8x4xf32>
    %cst_24 = arith.constant 2.000000e-01 : f32
    %40 = vector.broadcast %cst_24 : f32 to vector<8x8x4xf32>
    %41 = arith.mulf %40, %37 : vector<8x8x4xf32>
    %42 = arith.select %39, %37, %41 : vector<8x8x4xi1>, vector<8x8x4xf32>
    %43 = vector.broadcast %33 : vector<8x8x1xf32> to vector<8x8x4xf32>
    %44 = arith.mulf %42, %43 : vector<8x8x4xf32>
    %45 = vector.shape_cast %44 : vector<8x8x4xf32> to vector<64x4xf32>
    %c1_25 = arith.constant 1 : index
    %c0_26 = arith.constant 0 : index
    %c0_27 = arith.constant 0 : index
    %46 = vector.load %arg6[%c1_25, %c0_26, %c0_27] : memref<9x4x8xf32, #tpu.memory_space<vmem>>, vector<1x4x8xf32>
    %47 = vector.shape_cast %46 : vector<1x4x8xf32> to vector<4x8xf32>
    %cst_28 = arith.constant dense<0.000000e+00> : vector<64x8xf32>
    %48 = tpu.matmul %45, %47, %cst_28 {dimension_numbers = #tpu.dot_dimension_numbers<[1], [0], [0], [1], [0, 0, 1, 1], [], []>} : vector<64x4xf32>, vector<4x8xf32>, vector<64x8xf32> -> vector<64x8xf32>
    %49 = arith.addf %26, %48 : vector<64x8xf32>
    %c0_i32_29 = arith.constant 0 : i32
    %50 = arith.addi %0, %c0_i32_29 : i32
    %c0_30 = arith.constant 0 : index
    %51 = arith.index_cast %50 : i32 to index
    %c2 = arith.constant 2 : index
    %c0_31 = arith.constant 0 : index
    %52 = vector.load %arg2[%c0_30, %51, %c2, %c0_31] : memref<1x10x10x4xf32, #tpu.memory_space<vmem>>, vector<1x8x8x4xf32>
    %53 = vector.shape_cast %52 : vector<1x8x8x4xf32> to vector<8x8x4xf32>
    %c0_i32_32 = arith.constant 0 : i32
    %54 = arith.addi %0, %c0_i32_32 : i32
    %55 = arith.index_cast %54 : i32 to index
    %c2_33 = arith.constant 2 : index
    %c0_34 = arith.constant 0 : index
    %56 = vector.load %arg3[%55, %c2_33, %c0_34] : memref<10x10x1xf32, #tpu.memory_space<vmem>>, vector<8x8x1xf32>
    %57 = vector.broadcast %1 : vector<1x1x4xf32> to vector<8x8x4xf32>
    %58 = arith.mulf %53, %57 : vector<8x8x4xf32>
    %59 = vector.broadcast %2 : vector<1x1x4xf32> to vector<8x8x4xf32>
    %60 = arith.addf %58, %59 : vector<8x8x4xf32>
    %cst_35 = arith.constant 0.000000e+00 : f32
    %61 = vector.broadcast %cst_35 : f32 to vector<8x8x4xf32>
    %62 = arith.cmpf oge, %60, %61 : vector<8x8x4xf32>
    %cst_36 = arith.constant 2.000000e-01 : f32
    %63 = vector.broadcast %cst_36 : f32 to vector<8x8x4xf32>
    %64 = arith.mulf %63, %60 : vector<8x8x4xf32>
    %65 = arith.select %62, %60, %64 : vector<8x8x4xi1>, vector<8x8x4xf32>
    %66 = vector.broadcast %56 : vector<8x8x1xf32> to vector<8x8x4xf32>
    %67 = arith.mulf %65, %66 : vector<8x8x4xf32>
    %68 = vector.shape_cast %67 : vector<8x8x4xf32> to vector<64x4xf32>
    %c2_37 = arith.constant 2 : index
    %c0_38 = arith.constant 0 : index
    %c0_39 = arith.constant 0 : index
    %69 = vector.load %arg6[%c2_37, %c0_38, %c0_39] : memref<9x4x8xf32, #tpu.memory_space<vmem>>, vector<1x4x8xf32>
    %70 = vector.shape_cast %69 : vector<1x4x8xf32> to vector<4x8xf32>
    %cst_40 = arith.constant dense<0.000000e+00> : vector<64x8xf32>
    %71 = tpu.matmul %68, %70, %cst_40 {dimension_numbers = #tpu.dot_dimension_numbers<[1], [0], [0], [1], [0, 0, 1, 1], [], []>} : vector<64x4xf32>, vector<4x8xf32>, vector<64x8xf32> -> vector<64x8xf32>
    %72 = arith.addf %49, %71 : vector<64x8xf32>
    %c1_i32 = arith.constant 1 : i32
    %73 = arith.addi %0, %c1_i32 : i32
    %c0_41 = arith.constant 0 : index
    %74 = arith.index_cast %73 : i32 to index
    %c0_42 = arith.constant 0 : index
    %c0_43 = arith.constant 0 : index
    %75 = vector.load %arg2[%c0_41, %74, %c0_42, %c0_43] : memref<1x10x10x4xf32, #tpu.memory_space<vmem>>, vector<1x8x8x4xf32>
    %76 = vector.shape_cast %75 : vector<1x8x8x4xf32> to vector<8x8x4xf32>
    %c1_i32_44 = arith.constant 1 : i32
    %77 = arith.addi %0, %c1_i32_44 : i32
    %78 = arith.index_cast %77 : i32 to index
    %c0_45 = arith.constant 0 : index
    %c0_46 = arith.constant 0 : index
    %79 = vector.load %arg3[%78, %c0_45, %c0_46] : memref<10x10x1xf32, #tpu.memory_space<vmem>>, vector<8x8x1xf32>
    %80 = vector.broadcast %1 : vector<1x1x4xf32> to vector<8x8x4xf32>
    %81 = arith.mulf %76, %80 : vector<8x8x4xf32>
    %82 = vector.broadcast %2 : vector<1x1x4xf32> to vector<8x8x4xf32>
    %83 = arith.addf %81, %82 : vector<8x8x4xf32>
    %cst_47 = arith.constant 0.000000e+00 : f32
    %84 = vector.broadcast %cst_47 : f32 to vector<8x8x4xf32>
    %85 = arith.cmpf oge, %83, %84 : vector<8x8x4xf32>
    %cst_48 = arith.constant 2.000000e-01 : f32
    %86 = vector.broadcast %cst_48 : f32 to vector<8x8x4xf32>
    %87 = arith.mulf %86, %83 : vector<8x8x4xf32>
    %88 = arith.select %85, %83, %87 : vector<8x8x4xi1>, vector<8x8x4xf32>
    %89 = vector.broadcast %79 : vector<8x8x1xf32> to vector<8x8x4xf32>
    %90 = arith.mulf %88, %89 : vector<8x8x4xf32>
    %91 = vector.shape_cast %90 : vector<8x8x4xf32> to vector<64x4xf32>
    %c3 = arith.constant 3 : index
    %c0_49 = arith.constant 0 : index
    %c0_50 = arith.constant 0 : index
    %92 = vector.load %arg6[%c3, %c0_49, %c0_50] : memref<9x4x8xf32, #tpu.memory_space<vmem>>, vector<1x4x8xf32>
    %93 = vector.shape_cast %92 : vector<1x4x8xf32> to vector<4x8xf32>
    %cst_51 = arith.constant dense<0.000000e+00> : vector<64x8xf32>
    %94 = tpu.matmul %91, %93, %cst_51 {dimension_numbers = #tpu.dot_dimension_numbers<[1], [0], [0], [1], [0, 0, 1, 1], [], []>} : vector<64x4xf32>, vector<4x8xf32>, vector<64x8xf32> -> vector<64x8xf32>
    %95 = arith.addf %72, %94 : vector<64x8xf32>
    %c1_i32_52 = arith.constant 1 : i32
    %96 = arith.addi %0, %c1_i32_52 : i32
    %c0_53 = arith.constant 0 : index
    %97 = arith.index_cast %96 : i32 to index
    %c1_54 = arith.constant 1 : index
    %c0_55 = arith.constant 0 : index
    %98 = vector.load %arg2[%c0_53, %97, %c1_54, %c0_55] : memref<1x10x10x4xf32, #tpu.memory_space<vmem>>, vector<1x8x8x4xf32>
    %99 = vector.shape_cast %98 : vector<1x8x8x4xf32> to vector<8x8x4xf32>
    %c1_i32_56 = arith.constant 1 : i32
    %100 = arith.addi %0, %c1_i32_56 : i32
    %101 = arith.index_cast %100 : i32 to index
    %c1_57 = arith.constant 1 : index
    %c0_58 = arith.constant 0 : index
    %102 = vector.load %arg3[%101, %c1_57, %c0_58] : memref<10x10x1xf32, #tpu.memory_space<vmem>>, vector<8x8x1xf32>
    %103 = vector.broadcast %1 : vector<1x1x4xf32> to vector<8x8x4xf32>
    %104 = arith.mulf %99, %103 : vector<8x8x4xf32>
    %105 = vector.broadcast %2 : vector<1x1x4xf32> to vector<8x8x4xf32>
    %106 = arith.addf %104, %105 : vector<8x8x4xf32>
    %cst_59 = arith.constant 0.000000e+00 : f32
    %107 = vector.broadcast %cst_59 : f32 to vector<8x8x4xf32>
    %108 = arith.cmpf oge, %106, %107 : vector<8x8x4xf32>
    %cst_60 = arith.constant 2.000000e-01 : f32
    %109 = vector.broadcast %cst_60 : f32 to vector<8x8x4xf32>
    %110 = arith.mulf %109, %106 : vector<8x8x4xf32>
    %111 = arith.select %108, %106, %110 : vector<8x8x4xi1>, vector<8x8x4xf32>
    %112 = vector.broadcast %102 : vector<8x8x1xf32> to vector<8x8x4xf32>
    %113 = arith.mulf %111, %112 : vector<8x8x4xf32>
    %114 = vector.shape_cast %113 : vector<8x8x4xf32> to vector<64x4xf32>
    %c4 = arith.constant 4 : index
    %c0_61 = arith.constant 0 : index
    %c0_62 = arith.constant 0 : index
    %115 = vector.load %arg6[%c4, %c0_61, %c0_62] : memref<9x4x8xf32, #tpu.memory_space<vmem>>, vector<1x4x8xf32>
    %116 = vector.shape_cast %115 : vector<1x4x8xf32> to vector<4x8xf32>
    %cst_63 = arith.constant dense<0.000000e+00> : vector<64x8xf32>
    %117 = tpu.matmul %114, %116, %cst_63 {dimension_numbers = #tpu.dot_dimension_numbers<[1], [0], [0], [1], [0, 0, 1, 1], [], []>} : vector<64x4xf32>, vector<4x8xf32>, vector<64x8xf32> -> vector<64x8xf32>
    %118 = arith.addf %95, %117 : vector<64x8xf32>
    %c1_i32_64 = arith.constant 1 : i32
    %119 = arith.addi %0, %c1_i32_64 : i32
    %c0_65 = arith.constant 0 : index
    %120 = arith.index_cast %119 : i32 to index
    %c2_66 = arith.constant 2 : index
    %c0_67 = arith.constant 0 : index
    %121 = vector.load %arg2[%c0_65, %120, %c2_66, %c0_67] : memref<1x10x10x4xf32, #tpu.memory_space<vmem>>, vector<1x8x8x4xf32>
    %122 = vector.shape_cast %121 : vector<1x8x8x4xf32> to vector<8x8x4xf32>
    %c1_i32_68 = arith.constant 1 : i32
    %123 = arith.addi %0, %c1_i32_68 : i32
    %124 = arith.index_cast %123 : i32 to index
    %c2_69 = arith.constant 2 : index
    %c0_70 = arith.constant 0 : index
    %125 = vector.load %arg3[%124, %c2_69, %c0_70] : memref<10x10x1xf32, #tpu.memory_space<vmem>>, vector<8x8x1xf32>
    %126 = vector.broadcast %1 : vector<1x1x4xf32> to vector<8x8x4xf32>
    %127 = arith.mulf %122, %126 : vector<8x8x4xf32>
    %128 = vector.broadcast %2 : vector<1x1x4xf32> to vector<8x8x4xf32>
    %129 = arith.addf %127, %128 : vector<8x8x4xf32>
    %cst_71 = arith.constant 0.000000e+00 : f32
    %130 = vector.broadcast %cst_71 : f32 to vector<8x8x4xf32>
    %131 = arith.cmpf oge, %129, %130 : vector<8x8x4xf32>
    %cst_72 = arith.constant 2.000000e-01 : f32
    %132 = vector.broadcast %cst_72 : f32 to vector<8x8x4xf32>
    %133 = arith.mulf %132, %129 : vector<8x8x4xf32>
    %134 = arith.select %131, %129, %133 : vector<8x8x4xi1>, vector<8x8x4xf32>
    %135 = vector.broadcast %125 : vector<8x8x1xf32> to vector<8x8x4xf32>
    %136 = arith.mulf %134, %135 : vector<8x8x4xf32>
    %137 = vector.shape_cast %136 : vector<8x8x4xf32> to vector<64x4xf32>
    %c5 = arith.constant 5 : index
    %c0_73 = arith.constant 0 : index
    %c0_74 = arith.constant 0 : index
    %138 = vector.load %arg6[%c5, %c0_73, %c0_74] : memref<9x4x8xf32, #tpu.memory_space<vmem>>, vector<1x4x8xf32>
    %139 = vector.shape_cast %138 : vector<1x4x8xf32> to vector<4x8xf32>
    %cst_75 = arith.constant dense<0.000000e+00> : vector<64x8xf32>
    %140 = tpu.matmul %137, %139, %cst_75 {dimension_numbers = #tpu.dot_dimension_numbers<[1], [0], [0], [1], [0, 0, 1, 1], [], []>} : vector<64x4xf32>, vector<4x8xf32>, vector<64x8xf32> -> vector<64x8xf32>
    %141 = arith.addf %118, %140 : vector<64x8xf32>
    %c2_i32 = arith.constant 2 : i32
    %142 = arith.addi %0, %c2_i32 : i32
    %c0_76 = arith.constant 0 : index
    %143 = arith.index_cast %142 : i32 to index
    %c0_77 = arith.constant 0 : index
    %c0_78 = arith.constant 0 : index
    %144 = vector.load %arg2[%c0_76, %143, %c0_77, %c0_78] : memref<1x10x10x4xf32, #tpu.memory_space<vmem>>, vector<1x8x8x4xf32>
    %145 = vector.shape_cast %144 : vector<1x8x8x4xf32> to vector<8x8x4xf32>
    %c2_i32_79 = arith.constant 2 : i32
    %146 = arith.addi %0, %c2_i32_79 : i32
    %147 = arith.index_cast %146 : i32 to index
    %c0_80 = arith.constant 0 : index
    %c0_81 = arith.constant 0 : index
    %148 = vector.load %arg3[%147, %c0_80, %c0_81] : memref<10x10x1xf32, #tpu.memory_space<vmem>>, vector<8x8x1xf32>
    %149 = vector.broadcast %1 : vector<1x1x4xf32> to vector<8x8x4xf32>
    %150 = arith.mulf %145, %149 : vector<8x8x4xf32>
    %151 = vector.broadcast %2 : vector<1x1x4xf32> to vector<8x8x4xf32>
    %152 = arith.addf %150, %151 : vector<8x8x4xf32>
    %cst_82 = arith.constant 0.000000e+00 : f32
    %153 = vector.broadcast %cst_82 : f32 to vector<8x8x4xf32>
    %154 = arith.cmpf oge, %152, %153 : vector<8x8x4xf32>
    %cst_83 = arith.constant 2.000000e-01 : f32
    %155 = vector.broadcast %cst_83 : f32 to vector<8x8x4xf32>
    %156 = arith.mulf %155, %152 : vector<8x8x4xf32>
    %157 = arith.select %154, %152, %156 : vector<8x8x4xi1>, vector<8x8x4xf32>
    %158 = vector.broadcast %148 : vector<8x8x1xf32> to vector<8x8x4xf32>
    %159 = arith.mulf %157, %158 : vector<8x8x4xf32>
    %160 = vector.shape_cast %159 : vector<8x8x4xf32> to vector<64x4xf32>
    %c6 = arith.constant 6 : index
    %c0_84 = arith.constant 0 : index
    %c0_85 = arith.constant 0 : index
    %161 = vector.load %arg6[%c6, %c0_84, %c0_85] : memref<9x4x8xf32, #tpu.memory_space<vmem>>, vector<1x4x8xf32>
    %162 = vector.shape_cast %161 : vector<1x4x8xf32> to vector<4x8xf32>
    %cst_86 = arith.constant dense<0.000000e+00> : vector<64x8xf32>
    %163 = tpu.matmul %160, %162, %cst_86 {dimension_numbers = #tpu.dot_dimension_numbers<[1], [0], [0], [1], [0, 0, 1, 1], [], []>} : vector<64x4xf32>, vector<4x8xf32>, vector<64x8xf32> -> vector<64x8xf32>
    %164 = arith.addf %141, %163 : vector<64x8xf32>
    %c2_i32_87 = arith.constant 2 : i32
    %165 = arith.addi %0, %c2_i32_87 : i32
    %c0_88 = arith.constant 0 : index
    %166 = arith.index_cast %165 : i32 to index
    %c1_89 = arith.constant 1 : index
    %c0_90 = arith.constant 0 : index
    %167 = vector.load %arg2[%c0_88, %166, %c1_89, %c0_90] : memref<1x10x10x4xf32, #tpu.memory_space<vmem>>, vector<1x8x8x4xf32>
    %168 = vector.shape_cast %167 : vector<1x8x8x4xf32> to vector<8x8x4xf32>
    %c2_i32_91 = arith.constant 2 : i32
    %169 = arith.addi %0, %c2_i32_91 : i32
    %170 = arith.index_cast %169 : i32 to index
    %c1_92 = arith.constant 1 : index
    %c0_93 = arith.constant 0 : index
    %171 = vector.load %arg3[%170, %c1_92, %c0_93] : memref<10x10x1xf32, #tpu.memory_space<vmem>>, vector<8x8x1xf32>
    %172 = vector.broadcast %1 : vector<1x1x4xf32> to vector<8x8x4xf32>
    %173 = arith.mulf %168, %172 : vector<8x8x4xf32>
    %174 = vector.broadcast %2 : vector<1x1x4xf32> to vector<8x8x4xf32>
    %175 = arith.addf %173, %174 : vector<8x8x4xf32>
    %cst_94 = arith.constant 0.000000e+00 : f32
    %176 = vector.broadcast %cst_94 : f32 to vector<8x8x4xf32>
    %177 = arith.cmpf oge, %175, %176 : vector<8x8x4xf32>
    %cst_95 = arith.constant 2.000000e-01 : f32
    %178 = vector.broadcast %cst_95 : f32 to vector<8x8x4xf32>
    %179 = arith.mulf %178, %175 : vector<8x8x4xf32>
    %180 = arith.select %177, %175, %179 : vector<8x8x4xi1>, vector<8x8x4xf32>
    %181 = vector.broadcast %171 : vector<8x8x1xf32> to vector<8x8x4xf32>
    %182 = arith.mulf %180, %181 : vector<8x8x4xf32>
    %183 = vector.shape_cast %182 : vector<8x8x4xf32> to vector<64x4xf32>
    %c7 = arith.constant 7 : index
    %c0_96 = arith.constant 0 : index
    %c0_97 = arith.constant 0 : index
    %184 = vector.load %arg6[%c7, %c0_96, %c0_97] : memref<9x4x8xf32, #tpu.memory_space<vmem>>, vector<1x4x8xf32>
    %185 = vector.shape_cast %184 : vector<1x4x8xf32> to vector<4x8xf32>
    %cst_98 = arith.constant dense<0.000000e+00> : vector<64x8xf32>
    %186 = tpu.matmul %183, %185, %cst_98 {dimension_numbers = #tpu.dot_dimension_numbers<[1], [0], [0], [1], [0, 0, 1, 1], [], []>} : vector<64x4xf32>, vector<4x8xf32>, vector<64x8xf32> -> vector<64x8xf32>
    %187 = arith.addf %164, %186 : vector<64x8xf32>
    %c2_i32_99 = arith.constant 2 : i32
    %188 = arith.addi %0, %c2_i32_99 : i32
    %c0_100 = arith.constant 0 : index
    %189 = arith.index_cast %188 : i32 to index
    %c2_101 = arith.constant 2 : index
    %c0_102 = arith.constant 0 : index
    %190 = vector.load %arg2[%c0_100, %189, %c2_101, %c0_102] : memref<1x10x10x4xf32, #tpu.memory_space<vmem>>, vector<1x8x8x4xf32>
    %191 = vector.shape_cast %190 : vector<1x8x8x4xf32> to vector<8x8x4xf32>
    %c2_i32_103 = arith.constant 2 : i32
    %192 = arith.addi %0, %c2_i32_103 : i32
    %193 = arith.index_cast %192 : i32 to index
    %c2_104 = arith.constant 2 : index
    %c0_105 = arith.constant 0 : index
    %194 = vector.load %arg3[%193, %c2_104, %c0_105] : memref<10x10x1xf32, #tpu.memory_space<vmem>>, vector<8x8x1xf32>
    %195 = vector.broadcast %1 : vector<1x1x4xf32> to vector<8x8x4xf32>
    %196 = arith.mulf %191, %195 : vector<8x8x4xf32>
    %197 = vector.broadcast %2 : vector<1x1x4xf32> to vector<8x8x4xf32>
    %198 = arith.addf %196, %197 : vector<8x8x4xf32>
    %cst_106 = arith.constant 0.000000e+00 : f32
    %199 = vector.broadcast %cst_106 : f32 to vector<8x8x4xf32>
    %200 = arith.cmpf oge, %198, %199 : vector<8x8x4xf32>
    %cst_107 = arith.constant 2.000000e-01 : f32
    %201 = vector.broadcast %cst_107 : f32 to vector<8x8x4xf32>
    %202 = arith.mulf %201, %198 : vector<8x8x4xf32>
    %203 = arith.select %200, %198, %202 : vector<8x8x4xi1>, vector<8x8x4xf32>
    %204 = vector.broadcast %194 : vector<8x8x1xf32> to vector<8x8x4xf32>
    %205 = arith.mulf %203, %204 : vector<8x8x4xf32>
    %206 = vector.shape_cast %205 : vector<8x8x4xf32> to vector<64x4xf32>
    %c8 = arith.constant 8 : index
    %c0_108 = arith.constant 0 : index
    %c0_109 = arith.constant 0 : index
    %207 = vector.load %arg6[%c8, %c0_108, %c0_109] : memref<9x4x8xf32, #tpu.memory_space<vmem>>, vector<1x4x8xf32>
    %208 = vector.shape_cast %207 : vector<1x4x8xf32> to vector<4x8xf32>
    %cst_110 = arith.constant dense<0.000000e+00> : vector<64x8xf32>
    %209 = tpu.matmul %206, %208, %cst_110 {dimension_numbers = #tpu.dot_dimension_numbers<[1], [0], [0], [1], [0, 0, 1, 1], [], []>} : vector<64x4xf32>, vector<4x8xf32>, vector<64x8xf32> -> vector<64x8xf32>
    %210 = arith.addf %187, %209 : vector<64x8xf32>
    %c0_111 = arith.constant 0 : index
    %c0_112 = arith.constant 0 : index
    %211 = vector.load %arg7[%c0_111, %c0_112] : memref<1x8xf32, #tpu.memory_space<vmem>>, vector<1x8xf32>
    %212 = vector.broadcast %211 : vector<1x8xf32> to vector<64x8xf32>
    %213 = arith.addf %210, %212 : vector<64x8xf32>
    %c0_113 = arith.constant 0 : index
    %c0_114 = arith.constant 0 : index
    %c0_115 = arith.constant 0 : index
    %214 = vector.load %arg8[%c0_113, %c0_114, %c0_115] : memref<1x64x8xf32, #tpu.memory_space<vmem>>, vector<1x64x8xf32>
    %215 = vector.shape_cast %214 : vector<1x64x8xf32> to vector<64x8xf32>
    %216 = vector.shape_cast %213 : vector<64x8xf32> to vector<1x64x8xf32>
    tpu.vector_store %arg8[%c0_113, %c0_114, %c0_115], %216 {strides = array<i32>} : memref<1x64x8xf32, #tpu.memory_space<vmem>>, vector<1x64x8xf32>,
    %cst_116 = arith.constant dense<0.000000e+00> : vector<8xf32>
    %217 = vector.multi_reduction <add>, %213, %cst_116 [0] : vector<64x8xf32> to vector<8xf32>
    %218 = vector.shape_cast %217 : vector<8xf32> to vector<1x8xf32>
    %219 = arith.mulf %213, %213 : vector<64x8xf32>
    %cst_117 = arith.constant dense<0.000000e+00> : vector<8xf32>
    %220 = vector.multi_reduction <add>, %219, %cst_117 [0] : vector<64x8xf32> to vector<8xf32>
    %221 = vector.shape_cast %220 : vector<8xf32> to vector<1x8xf32>
    %222 = tpu.concatenate %218, %221 in 0 : vector<1x8xf32>, vector<1x8xf32> -> vector<2x8xf32>
    %c0_118 = arith.constant 0 : index
    %c0_119 = arith.constant 0 : index
    %c0_120 = arith.constant 0 : index
    %c0_121 = arith.constant 0 : index
    %223 = vector.load %arg9[%c0_118, %c0_119, %c0_120, %c0_121] : memref<1x1x2x8xf32, #tpu.memory_space<vmem>>, vector<1x1x2x8xf32>
    %224 = vector.shape_cast %223 : vector<1x1x2x8xf32> to vector<2x8xf32>
    %225 = vector.shape_cast %222 : vector<2x8xf32> to vector<1x1x2x8xf32>
    tpu.vector_store %arg9[%c0_118, %c0_119, %c0_120, %c0_121], %225 {strides = array<i32>} : memref<1x1x2x8xf32, #tpu.memory_space<vmem>>, vector<1x1x2x8xf32>,
    return
  }
  func.func @transform_0(%arg0: i32, %arg1: i32) -> (i32, i32, i32, i32) {
    %c0_i32 = arith.constant 0 : i32
    %c0_i32_0 = arith.constant 0 : i32
    %c0_i32_1 = arith.constant 0 : i32
    %c0_i32_2 = arith.constant 0 : i32
    return %arg0, %c0_i32, %c0_i32_0, %c0_i32_1 : i32, i32, i32, i32
  }
  func.func @transform_1(%arg0: i32, %arg1: i32) -> (i32, i32, i32) {
    %c0_i32 = arith.constant 0 : i32
    %c0_i32_0 = arith.constant 0 : i32
    %c0_i32_1 = arith.constant 0 : i32
    %c0_i32_2 = arith.constant 0 : i32
    return %c0_i32, %c0_i32_0, %c0_i32_1 : i32, i32, i32
  }
  func.func @transform_2(%arg0: i32, %arg1: i32) -> (i32, i32, i32) {
    %c0_i32 = arith.constant 0 : i32
    %c0_i32_0 = arith.constant 0 : i32
    %c0_i32_1 = arith.constant 0 : i32
    %c0_i32_2 = arith.constant 0 : i32
    return %c0_i32, %c0_i32_0, %c0_i32_1 : i32, i32, i32
  }
  func.func @transform_3(%arg0: i32, %arg1: i32) -> (i32, i32, i32) {
    %c0_i32 = arith.constant 0 : i32
    %c0_i32_0 = arith.constant 0 : i32
    %c0_i32_1 = arith.constant 0 : i32
    %c0_i32_2 = arith.constant 0 : i32
    return %c0_i32, %c0_i32_0, %c0_i32_1 : i32, i32, i32
  }
  func.func @transform_4(%arg0: i32, %arg1: i32) -> (i32, i32, i32) {
    %c0_i32 = arith.constant 0 : i32
    %c0_i32_0 = arith.constant 0 : i32
    %c0_i32_1 = arith.constant 0 : i32
    %c0_i32_2 = arith.constant 0 : i32
    return %c0_i32, %c0_i32_0, %c0_i32_1 : i32, i32, i32
  }
  func.func @transform_5(%arg0: i32, %arg1: i32) -> (i32, i32) {
    %c0_i32 = arith.constant 0 : i32
    %c0_i32_0 = arith.constant 0 : i32
    %c0_i32_1 = arith.constant 0 : i32
    return %c0_i32, %c0_i32_0 : i32, i32
  }
  func.func @transform_6(%arg0: i32, %arg1: i32) -> (i32, i32, i32) {
    %c0_i32 = arith.constant 0 : i32
    %c0_i32_0 = arith.constant 0 : i32
    return %arg0, %arg1, %c0_i32 : i32, i32, i32
  }
  func.func @transform_7(%arg0: i32, %arg1: i32) -> (i32, i32, i32, i32) {
    %c0_i32 = arith.constant 0 : i32
    %c0_i32_0 = arith.constant 0 : i32
    %c0_i32_1 = arith.constant 0 : i32
    return %arg0, %arg1, %c0_i32, %c0_i32_0 : i32, i32, i32, i32
  }
}

module attributes {stable_mosaic.version = 11 : i64} {
  func.func @_bn_lrelu_kernel(%arg0: i32, %arg1: memref<8x128xf32, #tpu.memory_space<vmem>>, %arg2: memref<1x128xf32, #tpu.memory_space<vmem>>, %arg3: memref<1x128xf32, #tpu.memory_space<vmem>>, %arg4: memref<8x128xf32, #tpu.memory_space<vmem>>) attributes {dimension_semantics = [#tpu.dimension_semantics<parallel>], iteration_bounds = array<i64: 1>, scalar_prefetch = 0 : i64, scratch_operands = 0 : i64, tpu.core_type = #tpu.core_type<tc>, window_params = [{transform_indices = @transform_0, window_bounds = array<i64: 8, 128>}, {pipeline_mode = #tpu.pipeline_mode<synchronous>, transform_indices = @transform_1, window_bounds = array<i64: 1, 128>}, {pipeline_mode = #tpu.pipeline_mode<synchronous>, transform_indices = @transform_2, window_bounds = array<i64: 1, 128>}, {transform_indices = @transform_3, window_bounds = array<i64: 8, 128>}]} {
    %c0 = arith.constant 0 : index
    %c0_0 = arith.constant 0 : index
    %0 = vector.load %arg1[%c0, %c0_0] : memref<8x128xf32, #tpu.memory_space<vmem>>, vector<8x128xf32>
    %c0_1 = arith.constant 0 : index
    %c0_2 = arith.constant 0 : index
    %1 = vector.load %arg2[%c0_1, %c0_2] : memref<1x128xf32, #tpu.memory_space<vmem>>, vector<1x128xf32>
    %2 = vector.broadcast %1 : vector<1x128xf32> to vector<8x128xf32>
    %3 = arith.mulf %0, %2 : vector<8x128xf32>
    %c0_3 = arith.constant 0 : index
    %c0_4 = arith.constant 0 : index
    %4 = vector.load %arg3[%c0_3, %c0_4] : memref<1x128xf32, #tpu.memory_space<vmem>>, vector<1x128xf32>
    %5 = vector.broadcast %4 : vector<1x128xf32> to vector<8x128xf32>
    %6 = arith.addf %3, %5 : vector<8x128xf32>
    %cst = arith.constant 0.000000e+00 : f32
    %7 = vector.broadcast %cst : f32 to vector<8x128xf32>
    %8 = arith.cmpf oge, %6, %7 : vector<8x128xf32>
    %cst_5 = arith.constant 2.000000e-01 : f32
    %9 = vector.broadcast %cst_5 : f32 to vector<8x128xf32>
    %10 = arith.mulf %9, %6 : vector<8x128xf32>
    %11 = arith.select %8, %6, %10 : vector<8x128xi1>, vector<8x128xf32>
    %c0_6 = arith.constant 0 : index
    %c0_7 = arith.constant 0 : index
    %12 = vector.load %arg4[%c0_6, %c0_7] : memref<8x128xf32, #tpu.memory_space<vmem>>, vector<8x128xf32>
    tpu.vector_store %arg4[%c0_6, %c0_7], %11 {strides = array<i32>} : memref<8x128xf32, #tpu.memory_space<vmem>>, vector<8x128xf32>,
    return
  }
  func.func @transform_0(%arg0: i32) -> (i32, i32) {
    %c0_i32 = arith.constant 0 : i32
    %c0_i32_0 = arith.constant 0 : i32
    return %arg0, %c0_i32 : i32, i32
  }
  func.func @transform_1(%arg0: i32) -> (i32, i32) {
    %c0_i32 = arith.constant 0 : i32
    %c0_i32_0 = arith.constant 0 : i32
    %c0_i32_1 = arith.constant 0 : i32
    return %c0_i32, %c0_i32_0 : i32, i32
  }
  func.func @transform_2(%arg0: i32) -> (i32, i32) {
    %c0_i32 = arith.constant 0 : i32
    %c0_i32_0 = arith.constant 0 : i32
    %c0_i32_1 = arith.constant 0 : i32
    return %c0_i32, %c0_i32_0 : i32, i32
  }
  func.func @transform_3(%arg0: i32) -> (i32, i32) {
    %c0_i32 = arith.constant 0 : i32
    %c0_i32_0 = arith.constant 0 : i32
    return %arg0, %c0_i32 : i32, i32
  }
}

</mosaic_0001>

<bundles_post_ra>
// kernel: tile.13
= control target key start
LH: loop header
LB: loop body
LE: loop exit
PB: predicated region body
PF: predicated region fallthrough
CT: control target
= control target key end

     0   :  { %s28_s0 = inlined_call_operand.vmem [shape: f32[8], index: 0, kind: input, shape index: {}]   ;;  %s29_s1 = inlined_call_operand.vmem [shape: f32[16,8], index: 1, kind: output, shape index: {}]  }
   0x1   :  { %v4_v0 = vld [vmem:[%s28_s0] ss:$0 sm:$0xff] }
   0x2   :  { %5 = vst [vmem:[%s29_s1] sm:$0xff] %v4_v0 }
   0x3   :  { %8 = vst [vmem:[%s29_s1 + $0x8] sm:$0xff] %v4_v0 }

// kernel: tile.14
= control target key start
LH: loop header
LB: loop body
LE: loop exit
PB: predicated region body
PF: predicated region fallthrough
CT: control target
= control target key end

     0   :  { %s131_s10 = smov 120   ;;  %s132_s11 = smov 104   ;;  %vm3_vm0 = vcmask 64512   ;;  %vm9_vm1 = vcmask 1048512   ;;  %vm15_vm2 = vcmask 982912   ;;  %vm21_vm3 = vcmask 917312   ;;  %s207_s0 = inlined_call_operand.vmem [shape: f32[16,8], index: 0, kind: input, shape index: {}]   ;;  %s208_s1 = inlined_call_operand.vmem [shape: f32[1,128], index: 1, kind: output, shape index: {}]  }
   0x1   :  { %v101_v0 = vld [vmem:[%s207_s0 + $0xf] sm:$0x1]   ;;  %v103_v1 = vld [vmem:[%s207_s0 + $0xd] sm:$0x1]   ;;  %v105_v2 = vld [vmem:[%s207_s0 + $0xb] sm:$0x1]  }
   0x2   :  { %7 = vrot.lane.b32.xlu0 %v101_v0, %s131_s10  ;;  %19 = vrot.lane.b32.xlu1 %v103_v1, %s132_s11  ;;  %s133_s14 = smov 88   ;;  %v102_v3 = vld [vmem:[%s207_s0 + $0xe] sm:$0x1]   ;;  %v104_v4 = vld [vmem:[%s207_s0 + $0xc] sm:$0x1]   ;;  %s134_s19 = smov 112  }
   0x3   :  { %31 = vrot.lane.b32.xlu2 %v105_v2, %s133_s14  ;;  %s135_s20 = smov 96   ;;  %v106_v5 = vld [vmem:[%s207_s0 + $0xa] sm:$0x1]   ;;  %s136_s23 = smov 80   ;;  %v107_v6 = vld [vmem:[%s207_s0 + $0x9] sm:$0x1]  }
   0x4   :  { %v108_v7 = vld [vmem:[%s207_s0 + $0x8] sm:$0x1]   ;;  %s137_s28 = smov 72   ;;  %s138_s29 = smov 64   ;;  %v109_v8 = vld [vmem:[%s207_s0 + $0x7] sm:$0x1]  }
   0x5   :  { %s139_s3 = smov 56   ;;  %v110_v9 = vld [vmem:[%s207_s0 + $0x6] sm:$0x1]   ;;  %v111_v10 = vld [vmem:[%s207_s0 + $0x5] sm:$0x1]   ;;  %s140_s8 = smov 48  }
   0x6   :  { %s141_s9 = smov 40   ;;  %v112_v11 = vld [vmem:[%s207_s0 + $0x4] sm:$0x1]   ;;  %s142_s12 = smov 32   ;;  %v113_v12 = vld [vmem:[%s207_s0 + $0x3] sm:$0x1]  }
   0x7   :  { %v114_v13 = vld [vmem:[%s207_s0 + $0x2] sm:$0x1]   ;;  %s143_s17 = smov 24   ;;  %s144_s18 = smov 16   ;;  %v115_v14 = vld [vmem:[%s207_s0 + $0x1] sm:$0x1]  }
   0x8   :  { %s145_s21 = smov 8   ;;  %v2_v15 = vld [vmem:[%s207_s0] sm:$0x1]   ;;  %vm27_vm4 = vcmask 851712   ;;  %vm33_vm5 = vcmask 786112   ;;  %vm39_vm6 = vcmask 720512  }
   0x9   :  { %4 = vst.msk [vmem:[#allocation0] sm:$0x1] %vm3_vm0, %v2_v15   ;;  %vm45_vm7 = vcmask 654912   ;;  %vm51_vm8 = vcmask 589312   ;;  %vm57_vm9 = vcmask 523712   ;;  %vm63_vm10 = vcmask 458112  }
   0xa   :  { %13 = vrot.lane.b32.xlu0 %v102_v3, %s134_s19  ;;  %25 = vrot.lane.b32.xlu1 %v104_v4, %s135_s20  ;;  %vm69_vm11 = vcmask 392512   ;;  %vm75_vm12 = vcmask 326912   ;;  %vm81_vm13 = vcmask 261312   ;;  %vm87_vm14 = vcmask 195712  }
   0xb   :  { %37 = vrot.lane.b32.xlu2 %v106_v5, %s136_s23  ;;  %vm93_vm15 = vcmask 130112  }
  0x12   :  { %43 = vrot.lane.b32.xlu0 %v107_v6, %s137_s28  ;;  %49 = vrot.lane.b32.xlu1 %v108_v7, %s138_s29 }
  0x13   :  { %55 = vrot.lane.b32.xlu2 %v109_v8, %s139_s3 }
  0x1a   :  { %61 = vrot.lane.b32.xlu0 %v110_v9, %s140_s8  ;;  %67 = vrot.lane.b32.xlu1 %v111_v10, %s141_s9 }
  0x1b   :  { %73 = vrot.lane.b32.xlu2 %v112_v11, %s142_s12 }
  0x22   :  { %79 = vrot.lane.b32.xlu0 %v113_v12, %s143_s17  ;;  %85 = vrot.lane.b32.xlu1 %v114_v13, %s144_s18 }
  0x23   :  { %91 = vrot.lane.b32.xlu2 %v115_v14, %s145_s21 }
  0x5d   :  { %v32_v16 = vpop.permute.xlu2 %31  }
  0x65   :  { %v38_v17 = vpop.permute.xlu2 %37  }
  0x6d   :  { %v56_v18 = vpop.permute.xlu2 %55  }
  0x74   :  { %v8_v19 = vpop.permute.xlu0 %7   ;;  %v20_v20 = vpop.permute.xlu1 %19  }
  0x75   :  { %10 = vst.msk [vmem:[#allocation0] sm:$0x1] %vm9_vm1, %v8_v19   ;;  %v74_v21 = vpop.permute.xlu2 %73  }
  0x7c   :  { %v14_v22 = vpop.permute.xlu0 %13   ;;  %v26_v23 = vpop.permute.xlu1 %25  }
  0x7d   :  { %16 = vst.msk [vmem:[#allocation0] sm:$0x1] %vm15_vm2, %v14_v22   ;;  %v92_v24 = vpop.permute.xlu2 %91  }
  0x7e   :  { %22 = vst.msk [vmem:[#allocation0] sm:$0x1] %vm21_vm3, %v20_v20  }
  0x7f   :  { %28 = vst.msk [vmem:[#allocation0] sm:$0x1] %vm27_vm4, %v26_v23  }
  0x80   :  { %34 = vst.msk [vmem:[#allocation0] sm:$0x1] %vm33_vm5, %v32_v16  }
  0x81   :  { %40 = vst.msk [vmem:[#allocation0] sm:$0x1] %vm39_vm6, %v38_v17  }
  0x84   :  { %v44_v25 = vpop.permute.xlu0 %43   ;;  %v50_v26 = vpop.permute.xlu1 %49  }
  0x85   :  { %46 = vst.msk [vmem:[#allocation0] sm:$0x1] %vm45_vm7, %v44_v25  }
  0x86   :  { %52 = vst.msk [vmem:[#allocation0] sm:$0x1] %vm51_vm8, %v50_v26  }
  0x87   :  { %58 = vst.msk [vmem:[#allocation0] sm:$0x1] %vm57_vm9, %v56_v18  }
  0x8c   :  { %v62_v27 = vpop.permute.xlu0 %61   ;;  %v68_v28 = vpop.permute.xlu1 %67  }
  0x8d   :  { %64 = vst.msk [vmem:[#allocation0] sm:$0x1] %vm63_vm10, %v62_v27  }
  0x8e   :  { %70 = vst.msk [vmem:[#allocation0] sm:$0x1] %vm69_vm11, %v68_v28  }
  0x8f   :  { %76 = vst.msk [vmem:[#allocation0] sm:$0x1] %vm75_vm12, %v74_v21  }
  0x94   :  { %v80_v29 = vpop.permute.xlu0 %79   ;;  %v86_v30 = vpop.permute.xlu1 %85  }
  0x95   :  { %82 = vst.msk [vmem:[#allocation0] sm:$0x1] %vm81_vm13, %v80_v29  }
  0x96   :  { %88 = vst.msk [vmem:[#allocation0] sm:$0x1] %vm87_vm14, %v86_v30  }
  0x97   :  { %94 = vst.msk [vmem:[#allocation0] sm:$0x1] %vm93_vm15, %v92_v24  }
  0x9e   :  { %v97_v31 = vld [vmem:[#allocation0] sm:$0x1] }
  0x9f   :  { %100 = vst [vmem:[%s208_s1] sm:$0x1] %v97_v31 }

// kernel: convolutional_block_forward.5
= control target key start
LH: loop header
LB: loop body
LE: loop exit
PB: predicated region body
PF: predicated region fallthrough
CT: control target
= control target key end

     0   :  { %s67_s0 = inlined_call_operand.vmem [shape: f32[8,128], index: 0, kind: input, shape index: {}]   ;;  %s68_s1 = inlined_call_operand.vmem [shape: f32[1,128], index: 1, kind: input, shape index: {}]   ;;  %s69_s2 = inlined_call_operand.vmem [shape: f32[1,128], index: 2, kind: input, shape index: {}]   ;;  %s70_s3 = inlined_call_operand.vmem [shape: f32[8,128], index: 3, kind: output, shape index: {}]  }
   0x1   :  { %v14_v0 = vld [vmem:[%s67_s0] sm:$0xff] }
   0x2   :  { %v33_v1 = vld [vmem:[%s68_s1] ss:$0 sm:$0xff] }
   0x3   :  { %v34_v2 = vld [vmem:[%s69_s2] ss:$0 sm:$0xff]  ;;  %v19_v3 = vmul.f32 %v33_v1, %v14_v0 }
   0x5   :  { %v24_v4 = vadd.f32 %v34_v2, %v19_v3 }
   0x7   :  { %vm25_vm0 = vcmp.ge.f32.partialorder %v24_v4, 0.0  ;;  %v26_v5 = vmul.f32 0.2, %v24_v4 }
   0x9   :  { %v27_v6 = vsel %vm25_vm0, %v24_v4, %v26_v5 }
   0xa   :  { %28 = vst [vmem:[%s70_s3] sm:$0xff] %v27_v6 }

// kernel: convolutional_block_forward.3
= control target key start
LH: loop header
LB: loop body
LE: loop exit
PB: predicated region body
PF: predicated region fallthrough
CT: control target
= control target key end

     0   :  { %s1619_s24 = smov 0   ;;  %s1621_s25 = smov 0   ;;  %s1989_s0 = inlined_call_operand.vmem [shape: f32[2,9,9,4], index: 0, kind: input, shape index: {}]   ;;  %s1990_s1 = inlined_call_operand.vmem [shape: f32[2,9,9,4], index: 1, kind: input, shape index: {}]   ;;  %s1991_s2 = inlined_call_operand.vmem [shape: f32[2,9,9,4], index: 2, kind: input, shape index: {}]   ;;  %s1992_s3 = inlined_call_operand.vmem [shape: f32[2,9,9,4], index: 3, kind: input, shape index: {}]   ;;  %s1993_s4 = inlined_call_operand.vmem [shape: f32[9,4,4], index: 4, kind: input, shape index: {}]   ;;  %s1994_s5 = inlined_call_operand.vmem [shape: f32[1,4], index: 5, kind: input, shape index: {}]   ;;  %s1995_s6 = inlined_call_operand.vmem [shape: f32[2,64,4], index: 6, kind: output, shape index: {0}]   ;;  %s1996_s7 = inlined_call_operand.vmem [shape: f32[2,1,2,4], index: 7, kind: output, shape index: {1}]  }
   0x1   :  { %s1623_s26 = smov 0  }
   0x2 LB: > { %s30_s27 = sadd.s32 1, %s1573_s25  ;;  %p1402_p0 = scmp.ge.s32.totalorder %s1577_s26, 1  ;;  %s1577_s26 = sphi %s1623_s26, %s18_s26   ;;  %s1573_s25 = sphi %s1621_s25, %s1998_s25   ;;  %s1569_s24 = sphi %s1619_s24, %s1997_s24  }
   0x3   : > { %p32_p1 = scmp.ge.s32.totalorder %s30_s27, 2  ;;  %p286_p2 = scmp.lt.s32.totalorder %s1577_s26, 3 }
   0x5   : > { %s2000_s27 = smov (%p32_p1, %s30_s27), 0  ;;  %p287_p3 = pnand %p1402_p0, %p286_p2 }
   0x6   : > { %p344_p4 = scmp.lt.s32.totalorder (!%p287_p3), %s1569_s24, 1 }
   0x7   : > { %290 = sbr.rel (%p287_p3) target bundleno = 314 (0x13a), region = 44 }
   0xc   : > { %v1410_v0 = vld [vmem:[%s1993_s4 + $0x4] sm:$0xf]  ;;  %vm429_vm0 = vcmask 1043456   ;;  %v1429_v1 = vld [vmem:[%s1993_s4 + $0x8] sm:$0xf]  ;;  %s2002_s24 = smov (!%p344_p4, %s1569_s24), 1 }
   0xd   : > { %1526 = vmatpush.msk.msra.mxu1 %vm429_vm0, %v1410_v0  ;;  %1527 = vmatpush.msk.msra.mxu2 %vm429_vm0, %v1410_v0  ;;  %v1439_v2 = vld [vmem:[%s1993_s4 + $0xc] sm:$0xf]  ;;  %v392_v3 = vld [vmem:[%s1993_s4] sm:$0xf]  ;;  %v1449_v4 = vld [vmem:[%s1993_s4 + $0x10] sm:$0xf] }
   0xe   : > { %1528 = vmatpush.msk.msra.mxu3 %vm429_vm0, %v1410_v0  ;;  %s1661_s15 = smul.u32 144, %s2002_s24  ;;  %1411 = vmatpush.msk.msra.mxu0 %vm429_vm0, %v1410_v0  ;;  %vm404_vm1 = vcmask 31744   ;;  %v1477_v5 = vld [vmem:[%s1993_s4 + $0x18] sm:$0xf]  ;;  %v1495_v6 = vld [vmem:[%s1993_s4 + $0x1c] sm:$0xf] }
   0xf   : > { %1430 = vmatpush.msk.msrb.mxu2 %vm429_vm0, %v1429_v1  ;;  %1420 = vmatpush.msk.msrb.mxu1 %vm429_vm0, %v392_v3  ;;  %v1459_v11 = vld [vmem:[%s1993_s4 + $0x14] sm:$0xf]  ;;  %v1513_v12 = vld [vmem:[%s1993_s4 + $0x20] sm:$0xf]  ;;  %s1409_s23 = sshll.u32 %s2002_s24, 1  ;;  %vm1220_vm2 = vcmask 1040384  }
  0x10   : > { %1440 = vmatpush.msk.msrb.mxu3 %vm429_vm0, %v1439_v2  ;;  %1450 = vmatpush.msk.msrb.mxu0 %vm429_vm0, %v1449_v4  ;;  %s1669_s18 = scalar_lea.vmem %s1990_s1, %s1661_s15  ;;  %s1728_s10 = scalar_lea.vmem %s1989_s0, %s1661_s15  ;;  %vm1222_vm3 = vcmask 25600  }
  0x11   : > { %v1678_v7 = vld [vmem:[%s1669_s18 + $0x20] sm:$0xff]  ;;  %v1705_v13 = vld [vmem:[%s1669_s18 + $0x30] sm:$0xff]  ;;  %s1734_s13 = scalar_lea.vmem %s1991_s2, %s1661_s15  ;;  %s1740_s17 = scalar_lea.vmem %s1992_s3, %s1661_s15 }
  0x12   : > { %v1681_v8 = vld [vmem:[%s1669_s18 + $0x40] sm:$0xff]  ;;  %1414 = vmatmul.msk.f32.vlgmr.msra.gmra.mxu1 %vm404_vm1, %v1678_v7  ;;  %v1708_v14 = vld [vmem:[%s1669_s18 + $0x50] sm:$0xff]  ;;  %s1525_s15 = sshll.u32 %s2002_s24, 6  ;;  %s380_s30 = scalar_lea.vmem %s1996_s7, %s1409_s23 }
  0x13   : > { %v1684_v9 = vld [vmem:[%s1669_s18 + $0x60] sm:$0xff]  ;;  %1416 = vmatmul.msk.f32.vlgmr.msra.gmra.mxu2 %vm404_vm1, %v1681_v8  ;;  %1460 = vmatpush.msk.msra.mxu1 %vm429_vm0, %v1459_v11  ;;  %v1711_v15 = vld [vmem:[%s1669_s18 + $0x70] sm:$0xff]  ;;  %s1912_s22 = scalar_lea.vmem %s1995_s6, %s1525_s15 }
  0x14   : > { %v394_v10 = vld [vmem:[%s1669_s18] sm:$0xff]  ;;  %1418 = vmatmul.msk.f32.vlgmr.msra.gmra.mxu3 %vm404_vm1, %v1684_v9  ;;  %1478 = vmatpush.msk.msra.mxu2 %vm429_vm0, %v1477_v5  ;;  %v1714_v16 = vld [vmem:[%s1669_s18 + $0x10] sm:$0xff] }
  0x15   : > { %1412 = vmatmul.msk.f32.vlgmr.msra.gmra.mxu0 %vm404_vm1, %v394_v10  ;;  %1496 = vmatpush.msk.msra.mxu3 %vm429_vm0, %v1495_v6  ;;  %v384_v17 = vld [vmem:[%s1728_s10] sm:$0xff]  ;;  %v385_v21 = vld [vmem:[%s1728_s10 + $0x10] sm:$0xff] }
  0x16   : > { %1514 = vmatpush.msk.msra.mxu0 %vm429_vm0, %v1513_v12  ;;  %v542_v18 = vld [vmem:[%s1728_s10 + $0x1] sm:$0xff]  ;;  %v543_v22 = vld [vmem:[%s1728_s10 + $0x11] sm:$0xff] }
  0x17   : > { %v629_v19 = vld [vmem:[%s1734_s13] sm:$0xff]  ;;  %v630_v23 = vld [vmem:[%s1734_s13 + $0x10] sm:$0xff] }
  0x18   : > { %v716_v20 = vld [vmem:[%s1740_s17] sm:$0xff]  ;;  %v717_v24 = vld [vmem:[%s1740_s17 + $0x10] sm:$0xff] }
  0x19   : > { %v386_v25 = vld [vmem:[%s1728_s10 + $0x20] sm:$0xff]  ;;  %v387_v29 = vld [vmem:[%s1728_s10 + $0x30] sm:$0xff] }
  0x1a   : > { %1415 = vmatmul.msk.f32.gmra.mxu1 %vm404_vm1, %v1705_v13  ;;  %v544_v26 = vld [vmem:[%s1728_s10 + $0x21] sm:$0xff]  ;;  %v545_v30 = vld [vmem:[%s1728_s10 + $0x31] sm:$0xff] }
  0x1b   : > { %1417 = vmatmul.msk.f32.gmra.mxu2 %vm404_vm1, %v1708_v14  ;;  %v631_v27 = vld [vmem:[%s1734_s13 + $0x20] sm:$0xff]  ;;  %v632_v31 = vld [vmem:[%s1734_s13 + $0x30] sm:$0xff] }
  0x1c   : > { %1419 = vmatmul.msk.f32.gmra.mxu3 %vm404_vm1, %v1711_v15  ;;  %v718_v28 = vld [vmem:[%s1740_s17 + $0x20] sm:$0xff]  ;;  %v719_v32 = vld [vmem:[%s1740_s17 + $0x30] sm:$0xff] }
  0x1d   : > { %1413 = vmatmul.msk.f32.gmra.mxu0 %vm404_vm1, %v1714_v16  ;;  %v388_v33 = vld [vmem:[%s1728_s10 + $0x40] sm:$0xff]  ;;  %v389_v37 = vld [vmem:[%s1728_s10 + $0x50] sm:$0xff] }
  0x1e   : > { %v546_v34 = vld [vmem:[%s1728_s10 + $0x41] sm:$0xff]  ;;  %v547_v38 = vld [vmem:[%s1728_s10 + $0x51] sm:$0xff] }
  0x1f   : > { %v633_v35 = vld [vmem:[%s1734_s13 + $0x40] sm:$0xff]  ;;  %v634_v39 = vld [vmem:[%s1734_s13 + $0x50] sm:$0xff] }
  0x20   : > { %v720_v36 = vld [vmem:[%s1740_s17 + $0x40] sm:$0xff]  ;;  %v721_v40 = vld [vmem:[%s1740_s17 + $0x50] sm:$0xff] }
  0x21   : > { %v390_v41 = vld [vmem:[%s1728_s10 + $0x60] sm:$0xff]  ;;  %v391_v45 = vld [vmem:[%s1728_s10 + $0x70] sm:$0xff] }
  0x22   : > { %1421 = vmatmul.msk.f32.vlgmr.msrb.gmra.mxu1 %vm404_vm1, %v384_v17  ;;  %v548_v42 = vld [vmem:[%s1728_s10 + $0x61] sm:$0xff]  ;;  %v549_v46 = vld [vmem:[%s1728_s10 + $0x71] sm:$0xff] }
  0x23   : > { %1431 = vmatmul.msk.f32.vlgmr.msrb.gmra.mxu2 %vm404_vm1, %v542_v18  ;;  %v635_v43 = vld [vmem:[%s1734_s13 + $0x60] sm:$0xff]  ;;  %v636_v47 = vld [vmem:[%s1734_s13 + $0x70] sm:$0xff] }
  0x24   : > { %1441 = vmatmul.msk.f32.vlgmr.msrb.gmra.mxu3 %vm404_vm1, %v629_v19  ;;  %v722_v44 = vld [vmem:[%s1740_s17 + $0x60] sm:$0xff]  ;;  %v723_v48 = vld [vmem:[%s1740_s17 + $0x70] sm:$0xff] }
  0x25   : > { %1451 = vmatmul.msk.f32.vlgmr.msrb.gmra.mxu0 %vm404_vm1, %v716_v20  ;;  %v802_v49 = vld [vmem:[%s1734_s13 + $0x1] sm:$0xff]  ;;  %v803_v50 = vld [vmem:[%s1734_s13 + $0x11] sm:$0xff] }
  0x26   : > { %v804_v51 = vld [vmem:[%s1734_s13 + $0x21] sm:$0xff]  ;;  %v805_v52 = vld [vmem:[%s1734_s13 + $0x31] sm:$0xff] }
  0x27   : > { %v806_v53 = vld [vmem:[%s1734_s13 + $0x41] sm:$0xff]  ;;  %v807_v54 = vld [vmem:[%s1734_s13 + $0x51] sm:$0xff] }
  0x28   : > { %v808_v56 = vld [vmem:[%s1734_s13 + $0x61] sm:$0xff]  ;;  %v809_v61 = vld [vmem:[%s1734_s13 + $0x71] sm:$0xff] }
  0x29   : > { %v1476_v62 = vld [vmem:[%s1728_s10 + $0x80] sm:$0xff] }
  0x2a   : > { %1422 = vmatmul.msk.f32.gmra.mxu1 %vm404_vm1, %v385_v21  ;;  %v1494_v63 = vld [vmem:[%s1669_s18 + $0x80] sm:$0xff] }
  0x2b   : > { %1432 = vmatmul.msk.f32.gmra.mxu2 %vm404_vm1, %v543_v22  ;;  %v1512_v1 = vld [vmem:[%s1728_s10 + $0x81] sm:$0xff] }
  0x2c   : > { %1442 = vmatmul.msk.f32.gmra.mxu3 %vm404_vm1, %v630_v23 }
  0x2d   : > { %1452 = vmatmul.msk.f32.gmra.mxu0 %vm404_vm1, %v717_v24 }
  0x32   : > { %1423 = vmatmul.msk.f32.gmra.mxu1 %vm404_vm1, %v386_v25 }
  0x33   : > { %1433 = vmatmul.msk.f32.gmra.mxu2 %vm404_vm1, %v544_v26 }
  0x34   : > { %1443 = vmatmul.msk.f32.gmra.mxu3 %vm404_vm1, %v631_v27 }
  0x35   : > { %1453 = vmatmul.msk.f32.gmra.mxu0 %vm404_vm1, %v718_v28 }
  0x3a   : > { %1424 = vmatmul.msk.f32.gmra.mxu1 %vm404_vm1, %v387_v29 }
  0x3b   : > { %1434 = vmatmul.msk.f32.gmra.mxu2 %vm404_vm1, %v545_v30 }
  0x3c   : > { %1444 = vmatmul.msk.f32.gmra.mxu3 %vm404_vm1, %v632_v31 }
  0x3d   : > { %1454 = vmatmul.msk.f32.gmra.mxu0 %vm404_vm1, %v719_v32 }
  0x42   : > { %1425 = vmatmul.msk.f32.gmra.mxu1 %vm404_vm1, %v388_v33 }
  0x43   : > { %1435 = vmatmul.msk.f32.gmra.mxu2 %vm404_vm1, %v546_v34 }
  0x44   : > { %1445 = vmatmul.msk.f32.gmra.mxu3 %vm404_vm1, %v633_v35 }
  0x45   : > { %1455 = vmatmul.msk.f32.gmra.mxu0 %vm404_vm1, %v720_v36 }
  0x4a   : > { %1426 = vmatmul.msk.f32.gmra.mxu1 %vm404_vm1, %v389_v37 }
  0x4b   : > { %1436 = vmatmul.msk.f32.gmra.mxu2 %vm404_vm1, %v547_v38 }
  0x4c   : > { %1446 = vmatmul.msk.f32.gmra.mxu3 %vm404_vm1, %v634_v39 }
  0x4d   : > { %1456 = vmatmul.msk.f32.gmra.mxu0 %vm404_vm1, %v721_v40 }
  0x52   : > { %1427 = vmatmul.msk.f32.gmra.mxu1 %vm404_vm1, %v390_v41 }
  0x53   : > { %1437 = vmatmul.msk.f32.gmra.mxu2 %vm404_vm1, %v548_v42 }
  0x54   : > { %1447 = vmatmul.msk.f32.gmra.mxu3 %vm404_vm1, %v635_v43 }
  0x55   : > { %1457 = vmatmul.msk.f32.gmra.mxu0 %vm404_vm1, %v722_v44 }
  0x5a   : > { %1428 = vmatmul.msk.f32.gmra.mxu1 %vm404_vm1, %v391_v45 }
  0x5b   : > { %1438 = vmatmul.msk.f32.gmra.mxu2 %vm404_vm1, %v549_v46 }
  0x5c   : > { %1448 = vmatmul.msk.f32.gmra.mxu3 %vm404_vm1, %v636_v47 }
  0x5d   : > { %1458 = vmatmul.msk.f32.gmra.mxu0 %vm404_vm1, %v723_v48 }
  0x62   : > { %1461 = vmatmul.msk.f32.vlgmr.msra.gmra.mxu1 %vm404_vm1, %v802_v49 }
  0x63   : > { %1479 = vmatmul.msk.f32.vlgmr.msra.gmra.mxu2 %vm404_vm1, %v385_v21 }
  0x64   : > { %1497 = vmatmul.msk.f32.vlgmr.msra.gmra.mxu3 %vm404_vm1, %v1714_v16 }
  0x65   : > { %1515 = vmatmul.msk.f32.vlgmr.msra.gmra.mxu0 %vm404_vm1, %v543_v22 }
  0x6a   : > { %1462 = vmatmul.msk.f32.gmra.mxu1 %vm404_vm1, %v803_v50 }
  0x6b   : > { %1480 = vmatmul.msk.f32.gmra.mxu2 %vm404_vm1, %v386_v25 }
  0x6c   : > { %1498 = vmatmul.msk.f32.gmra.mxu3 %vm404_vm1, %v1678_v7 }
  0x6d   : > { %1516 = vmatmul.msk.f32.gmra.mxu0 %vm404_vm1, %v544_v26 }
  0x72   : > { %1463 = vmatmul.msk.f32.gmra.mxu1 %vm404_vm1, %v804_v51 }
  0x73   : > { %1481 = vmatmul.msk.f32.gmra.mxu2 %vm404_vm1, %v387_v29 }
  0x74   : > { %1499 = vmatmul.msk.f32.gmra.mxu3 %vm404_vm1, %v1705_v13 }
  0x75   : > { %1517 = vmatmul.msk.f32.gmra.mxu0 %vm404_vm1, %v545_v30 }
  0x7a   : > { %1464 = vmatmul.msk.f32.gmra.mxu1 %vm404_vm1, %v805_v52  ;;  %v1907_v52 = vld [vmem:[%s1994_s5] ss:$0 sm:$0xff] }
  0x7b   : > { %1482 = vmatmul.msk.f32.gmra.mxu2 %vm404_vm1, %v388_v33 }
  0x7c   : > { %1500 = vmatmul.msk.f32.gmra.mxu3 %vm404_vm1, %v1681_v8 }
  0x7d   : > { %1518 = vmatmul.msk.f32.gmra.mxu0 %vm404_vm1, %v546_v34 }
  0x82   : > { %1465 = vmatmul.msk.f32.gmra.mxu1 %vm404_vm1, %v806_v53 }
  0x83   : > { %1483 = vmatmul.msk.f32.gmra.mxu2 %vm404_vm1, %v389_v37 }
  0x84   : > { %1501 = vmatmul.msk.f32.gmra.mxu3 %vm404_vm1, %v1708_v14 }
  0x85   : > { %1519 = vmatmul.msk.f32.gmra.mxu0 %vm404_vm1, %v547_v38 }
  0x8a   : > { %1466 = vmatmul.msk.f32.gmra.mxu1 %vm404_vm1, %v807_v54 }
  0x8b   : > { %1484 = vmatmul.msk.f32.gmra.mxu2 %vm404_vm1, %v390_v41 }
  0x8c   : > { %1502 = vmatmul.msk.f32.gmra.mxu3 %vm404_vm1, %v1684_v9 }
  0x8d   : > { %1520 = vmatmul.msk.f32.gmra.mxu0 %vm404_vm1, %v548_v42 }
  0x8f   : > { %v1842_v55 = vpop.f32.mrf.mxu1 }
  0x92   : > { %v450_v57 = vpop.f32.mrf.mxu0  ;;  %1467 = vmatmul.msk.f32.gmra.mxu1 %vm404_vm1, %v808_v56 }
  0x93   : > { %1485 = vmatmul.msk.f32.gmra.mxu2 %vm404_vm1, %v391_v45 }
  0x94   : > { %1503 = vmatmul.msk.f32.gmra.mxu3 %vm404_vm1, %v1711_v15 }
  0x95   : > { %1521 = vmatmul.msk.f32.gmra.mxu0 %vm404_vm1, %v549_v46 }
  0x96   : > { %v1850_v58 = vpop.f32.mrf.mxu2 }
  0x97   : > { %v1852_v59 = vpop.f32.mrf.mxu3  ;;  %v1854_v60 = vpop.f32.mrf.mxu1 }
  0x9a   : > { %v453_v0 = vpop.f32.mrf.mxu0  ;;  %1468 = vmatmul.msk.f32.gmra.mxu1 %vm404_vm1, %v809_v61 }
  0x9b   : > { %1486 = vmatmul.msk.f32.gmra.mxu2 %vm404_vm1, %v1476_v62 }
  0x9c   : > { %1504 = vmatmul.msk.f32.gmra.mxu3 %vm404_vm1, %v1494_v63 }
  0x9d   : > { %1522 = vmatmul.msk.f32.gmra.mxu0 %vm404_vm1, %v1512_v1 }
  0x9e   : > { %v1864_v2 = vpop.f32.mrf.mxu2 }
  0x9f   : > { %v1866_v3 = vpop.f32.mrf.mxu3  ;;  %v518_v4 = vpop.f32.mrf.mxu1 }
  0xa0   : > { %v519_v33 = vadd.f32 %v518_v4, %v450_v57 }
  0xa2   : > { %v770_v5 = vpop.f32.mrf.mxu0 }
  0xa6   : > { %v596_v6 = vpop.f32.mrf.mxu2 }
  0xa7   : > { %v683_v7 = vpop.f32.mrf.mxu3  ;;  %v521_v8 = vpop.f32.mrf.mxu1  ;;  %v620_v35 = vadd.f32 %v596_v6, %v519_v33 }
  0xa8   : > { %v522_v40 = vadd.f32 %v521_v8, %v453_v0 }
  0xa9   : > { %v707_v37 = vadd.f32 %v683_v7, %v620_v35 }
  0xaa   : > { %v773_v9 = vpop.f32.mrf.mxu0 }
  0xab   : > { %v794_v42 = vadd.f32 %v770_v5, %v707_v37 }
  0xae   : > { %v599_v10 = vpop.f32.mrf.mxu2 }
  0xaf   : > { %v686_v11 = vpop.f32.mrf.mxu3  ;;  %v524_v12 = vpop.f32.mrf.mxu1  ;;  %v621_v43 = vadd.f32 %v599_v10, %v522_v40 }
  0xb0   : > { %v525_v50 = vadd.f32 %v524_v12, %v1842_v55 }
  0xb1   : > { %v708_v46 = vadd.f32 %v686_v11, %v621_v43 }
  0xb2   : > { %v776_v13 = vpop.f32.mrf.mxu0 }
  0xb3   : > { %v795_v54 = vadd.f32 %v773_v9, %v708_v46 }
  0xb6   : > { %v602_v14 = vpop.f32.mrf.mxu2 }
  0xb7   : > { %v689_v15 = vpop.f32.mrf.mxu3  ;;  %v527_v16 = vpop.f32.mrf.mxu1  ;;  %v622_v56 = vadd.f32 %v602_v14, %v525_v50 }
  0xb8   : > { %v528_v4 = vadd.f32 %v527_v16, %v1854_v60 }
  0xb9   : > { %v709_v63 = vadd.f32 %v689_v15, %v622_v56 }
  0xba   : > { %v1868_v17 = vpop.f32.mrf.mxu0 }
  0xbb   : > { %v796_v9 = vadd.f32 %v776_v13, %v709_v63 }
  0xbe   : > { %v605_v18 = vpop.f32.mrf.mxu2 }
  0xbf   : > { %v692_v19 = vpop.f32.mrf.mxu3  ;;  %v1870_v20 = vpop.f32.mrf.mxu1  ;;  %v623_v8 = vadd.f32 %v605_v18, %v528_v4 }
  0xc0   : > { %v531_v13 = vadd.f32 %v1870_v20, %v1850_v58 }
  0xc1   : > { %v710_v33 = vadd.f32 %v692_v19, %v623_v8 }
  0xc2   : > { %v1872_v21 = vpop.f32.mrf.mxu0 }
  0xc6   : > { %v1874_v22 = vpop.f32.mrf.mxu2 }
  0xc7   : > { %v1876_v23 = vpop.f32.mrf.mxu3  ;;  %v1878_v24 = vpop.f32.mrf.mxu1  ;;  %v624_v46 = vadd.f32 %v1874_v22, %v531_v13 }
  0xca   : > { %v1880_v25 = vpop.f32.mrf.mxu0 }
  0xce   : > { %v1882_v26 = vpop.f32.mrf.mxu2 }
  0xcf   : > { %v1884_v27 = vpop.f32.mrf.mxu3  ;;  %v1886_v28 = vpop.f32.mrf.mxu1 }
  0xd2   : > { %v1888_v29 = vpop.f32.mrf.mxu0 }
  0xd6   : > { %v1890_v30 = vpop.f32.mrf.mxu2 }
  0xd7   : > { %v1892_v31 = vpop.f32.mrf.mxu3  ;;  %v1894_v32 = vpop.f32.mrf.mxu1 }
  0xda   : > { %v1896_v34 = vpop.f32.mrf.mxu0 }
  0xde   : > { %v1898_v36 = vpop.f32.mrf.mxu2 }
  0xdf   : > { %v1900_v38 = vpop.f32.mrf.mxu3  ;;  %v856_v39 = vpop.f32.mrf.mxu1 }
  0xe0   : > { %v880_v44 = vadd.f32 %v856_v39, %v794_v42 }
  0xe2   : > { %v1118_v41 = vpop.f32.mrf.mxu0 }
  0xe6   : > { %v945_v45 = vpop.f32.mrf.mxu2 }
  0xe7   : > { %v969_v47 = vadd.f32 %v945_v45, %v880_v44  ;;  %v1032_v48 = vpop.f32.mrf.mxu3  ;;  %v859_v49 = vpop.f32.mrf.mxu1  ;;  %v797_v45 = vadd.f32 %v1868_v17, %v710_v33  ;;  %v534_v17 = vadd.f32 %v1878_v24, %v1864_v2 }
  0xe8   : > { %v881_v61 = vadd.f32 %v859_v49, %v795_v54 }
  0xe9   : > { %v1056_v51 = vadd.f32 %v1032_v48, %v969_v47  ;;  %v625_v63 = vadd.f32 %v1882_v26, %v534_v17 }
  0xea   : > { %v1121_v53 = vpop.f32.mrf.mxu0 }
  0xeb   : > { %v1142_v57 = vadd.f32 %v1118_v41, %v1056_v51  ;;  %v711_v51 = vadd.f32 %v1876_v23, %v624_v46 }
  0xed   : > { %v1154_v55 = vadd.f32 %v1907_v52, %v1142_v57  ;;  %v798_v23 = vadd.f32 %v1872_v21, %v711_v51  ;;  %v537_v21 = vadd.f32 %v1886_v28, %v1852_v59 }
  0xee   : > { %v948_v62 = vpop.f32.mrf.mxu2 }
  0xef   : > { %1162 = vst.msk [vmem:[%s1912_s22] sm:$0xff] %vm404_vm1, %v1154_v55  ;;  %v970_v0 = vadd.f32 %v948_v62, %v881_v61  ;;  %v1035_v1 = vpop.f32.mrf.mxu3  ;;  %v862_v5 = vpop.f32.mrf.mxu1  ;;  %v1191_v11 = vmul.f32 %v1154_v55, %v1154_v55  ;;  %v1170_v15 = vsel %vm404_vm1, %v1154_v55, 0.0 }
  0xf0   : > { %v882_v12 = vadd.f32 %v862_v5, %v796_v9 }
  0xf1   : > { %v1057_v6 = vadd.f32 %v1035_v1, %v970_v0  ;;  %v1199_v41 = vsel %vm404_vm1, %v1191_v11, 0.0 }
  0xf2   : > { %v1124_v7 = vpop.f32.mrf.mxu0 }
  0xf3   : > { %v1143_v10 = vadd.f32 %v1121_v53, %v1057_v6  ;;  %v712_v6 = vadd.f32 %v1884_v27, %v625_v63  ;;  %v626_v27 = vadd.f32 %v1890_v30, %v537_v21  ;;  %v540_v30 = vadd.f32 %v1894_v32, %v1866_v3 }
  0xf5   : > { %v1155_v14 = vadd.f32 %v1907_v52, %v1143_v10 }
  0xf6   : > { %v951_v35 = vpop.f32.mrf.mxu2 }
  0xf7   : > { %1163 = vst.msk [vmem:[%s1912_s22 + $0x8] sm:$0xff] %vm404_vm1, %v1155_v14  ;;  %v1171_v37 = vsel %vm404_vm1, %v1155_v14, 0.0  ;;  %v1192_v39 = vmul.f32 %v1155_v14, %v1155_v14  ;;  %v971_v60 = vadd.f32 %v951_v35, %v882_v12  ;;  %v1038_v16 = vpop.f32.mrf.mxu3  ;;  %v865_v18 = vpop.f32.mrf.mxu1  ;;  %v799_v14 = vadd.f32 %v1880_v25, %v712_v6 }
  0xf8   : > { %v1172_v40 = vadd.f32 %v1171_v37, %v1170_v15  ;;  %v883_v48 = vadd.f32 %v865_v18, %v797_v45 }
  0xf9   : > { %v1200_v19 = vsel %vm404_vm1, %v1192_v39, 0.0  ;;  %v1058_v42 = vadd.f32 %v1038_v16, %v971_v60  ;;  %v713_v60 = vadd.f32 %v1892_v31, %v626_v27  ;;  %v627_v31 = vadd.f32 %v1898_v36, %v540_v30 }
  0xfa   : > { %v1127_v43 = vpop.f32.mrf.mxu0  ;;  %v1201_v44 = vadd.f32 %v1200_v19, %v1199_v41 }
  0xfb   : > { %v1144_v47 = vadd.f32 %v1124_v7, %v1058_v42  ;;  %v800_v42 = vadd.f32 %v1888_v29, %v713_v60 }
  0xfd   : > { %v1156_v49 = vadd.f32 %v1907_v52, %v1144_v47 }
  0xfe   : > { %v954_v50 = vpop.f32.mrf.mxu2 }
  0xff   : > { %1164 = vst.msk [vmem:[%s1912_s22 + $0x10] sm:$0xff] %vm404_vm1, %v1156_v49  ;;  %v1173_v58 = vsel %vm404_vm1, %v1156_v49, 0.0  ;;  %v1193_v20 = vmul.f32 %v1156_v49, %v1156_v49  ;;  %v972_v53 = vadd.f32 %v954_v50, %v883_v48  ;;  %v1041_v54 = vpop.f32.mrf.mxu3  ;;  %v868_v57 = vpop.f32.mrf.mxu1  ;;  %v714_v48 = vadd.f32 %v1900_v38, %v627_v31 }
 0x100   : > { %v1174_v56 = vadd.f32 %v1173_v58, %v1172_v40  ;;  %v884_v1 = vadd.f32 %v868_v57, %v798_v23 }
 0x101   : > { %v1202_v22 = vsel %vm404_vm1, %v1193_v20, 0.0  ;;  %v1059_v61 = vadd.f32 %v1041_v54, %v972_v53  ;;  %v801_v53 = vadd.f32 %v1896_v34, %v714_v48 }
 0x102   : > { %v1203_v55 = vadd.f32 %v1202_v22, %v1201_v44  ;;  %v1130_v62 = vpop.f32.mrf.mxu0 }
 0x103   : > { %v1145_v0 = vadd.f32 %v1127_v43, %v1059_v61 }
 0x105   : > { %v1157_v4 = vadd.f32 %v1907_v52, %v1145_v0 }
 0x106   : > { %v957_v5 = vpop.f32.mrf.mxu2 }
 0x107   : > { %1165 = vst.msk [vmem:[%s1912_s22 + $0x18] sm:$0xff] %vm404_vm1, %v1157_v4  ;;  %v1175_v2 = vsel %vm404_vm1, %v1157_v4, 0.0  ;;  %v1194_v24 = vmul.f32 %v1157_v4, %v1157_v4  ;;  %v973_v7 = vadd.f32 %v957_v5, %v884_v1  ;;  %v1044_v8 = vpop.f32.mrf.mxu3  ;;  %v871_v10 = vpop.f32.mrf.mxu1 }
 0x108   : > { %v1176_v9 = vadd.f32 %v1175_v2, %v1174_v56  ;;  %v885_v15 = vadd.f32 %v871_v10, %v799_v14 }
 0x109   : > { %v1204_v26 = vsel %vm404_vm1, %v1194_v24, 0.0  ;;  %v1060_v11 = vadd.f32 %v1044_v8, %v973_v7 }
 0x10a   : > { %v1205_v12 = vadd.f32 %v1204_v26, %v1203_v55  ;;  %v1133_v35 = vpop.f32.mrf.mxu0 }
 0x10b   : > { %v1146_v33 = vadd.f32 %v1130_v62, %v1060_v11 }
 0x10d   : > { %v1158_v37 = vadd.f32 %v1907_v52, %v1146_v33 }
 0x10e   : > { %v960_v39 = vpop.f32.mrf.mxu2 }
 0x10f   : > { %1166 = vst.msk [vmem:[%s1912_s22 + $0x20] sm:$0xff] %vm404_vm1, %v1158_v37  ;;  %v1177_v59 = vsel %vm404_vm1, %v1158_v37, 0.0  ;;  %v1195_v28 = vmul.f32 %v1158_v37, %v1158_v37  ;;  %v974_v16 = vadd.f32 %v960_v39, %v885_v15  ;;  %v1047_v40 = vpop.f32.mrf.mxu3  ;;  %v874_v25 = vpop.f32.mrf.mxu1 }
 0x110   : > { %v1178_v18 = vadd.f32 %v1177_v59, %v1176_v9  ;;  %v886_v44 = vadd.f32 %v874_v25, %v800_v42 }
 0x111   : > { %v1206_v13 = vsel %vm404_vm1, %v1195_v28, 0.0  ;;  %v1061_v41 = vadd.f32 %v1047_v40, %v974_v16 }
 0x112   : > { %v1207_v19 = vadd.f32 %v1206_v13, %v1205_v12  ;;  %v1136_v47 = vpop.f32.mrf.mxu0 }
 0x113   : > { %v1147_v43 = vadd.f32 %v1133_v35, %v1061_v41 }
 0x115   : > { %v1159_v45 = vadd.f32 %v1907_v52, %v1147_v43 }
 0x116   : > { %v963_v46 = vpop.f32.mrf.mxu2 }
 0x117   : > { %1167 = vst.msk [vmem:[%s1912_s22 + $0x28] sm:$0xff] %vm404_vm1, %v1159_v45  ;;  %v1179_v3 = vsel %vm404_vm1, %v1159_v45, 0.0  ;;  %v1196_v32 = vmul.f32 %v1159_v45, %v1159_v45  ;;  %v975_v49 = vadd.f32 %v963_v46, %v886_v44  ;;  %v1050_v50 = vpop.f32.mrf.mxu3  ;;  %v877_v20 = vpop.f32.mrf.mxu1 }
 0x118   : > { %v1180_v51 = vadd.f32 %v1179_v3, %v1178_v18  ;;  %v887_v56 = vadd.f32 %v877_v20, %v801_v53 }
 0x119   : > { %v1208_v29 = vsel %vm404_vm1, %v1196_v32, 0.0  ;;  %v1062_v36 = vadd.f32 %v1050_v50, %v975_v49 }
 0x11a   : > { %v1209_v58 = vadd.f32 %v1208_v29, %v1207_v19  ;;  %v1139_v23 = vpop.f32.mrf.mxu0 }
 0x11b   : > { %v1148_v54 = vadd.f32 %v1136_v47, %v1062_v36 }
 0x11d   : > { %v1160_v38 = vadd.f32 %v1907_v52, %v1148_v54 }
 0x11e   : > { %v966_v57 = vpop.f32.mrf.mxu2 }
 0x11f   : > { %1168 = vst.msk [vmem:[%s1912_s22 + $0x30] sm:$0xff] %vm404_vm1, %v1160_v38  ;;  %v1181_v17 = vsel %vm404_vm1, %v1160_v38, 0.0  ;;  %v1197_v22 = vmul.f32 %v1160_v38, %v1160_v38  ;;  %v976_v61 = vadd.f32 %v966_v57, %v887_v56  ;;  %v1053_v55 = vpop.f32.mrf.mxu3 }
 0x120   : > { %v1182_v62 = vadd.f32 %v1181_v17, %v1180_v51 }
 0x121   : > { %v1210_v63 = vsel %vm404_vm1, %v1197_v22, 0.0  ;;  %v1063_v0 = vadd.f32 %v1053_v55, %v976_v61 }
 0x122   : > { %v1211_v1 = vadd.f32 %v1210_v63, %v1209_v58 }
 0x123   : > { %v1149_v34 = vadd.f32 %v1139_v23, %v1063_v0 }
 0x125   : > { %v1161_v4 = vadd.f32 %v1907_v52, %v1149_v34 }
 0x127   : > { %1169 = vst.msk [vmem:[%s1912_s22 + $0x38] sm:$0xff] %vm404_vm1, %v1161_v4  ;;  %v1183_v5 = vsel %vm404_vm1, %v1161_v4, 0.0  ;;  %v1198_v6 = vmul.f32 %v1161_v4, %v1161_v4 }
 0x128   : > { %v1184_v2 = vadd.f32 %v1183_v5, %v1182_v62 }
 0x129   : > { %v1212_v24 = vsel %vm404_vm1, %v1198_v6, 0.0 }
 0x12a   : > { %v1185_v7 = vrot.slane %v1184_v2, 4  ;;  %v1213_v8 = vadd.f32 %v1212_v24, %v1211_v1 }
 0x12c   : > { %v1186_v9 = vadd.f32 %v1185_v7, %v1184_v2  ;;  %v1214_v10 = vrot.slane %v1213_v8, 4 }
 0x12e   : > { %v1187_v21 = vrot.slane %v1186_v9, 2  ;;  %v1215_v26 = vadd.f32 %v1214_v10, %v1213_v8 }
 0x130   : > { %v1188_v11 = vadd.f32 %v1187_v21, %v1186_v9  ;;  %v1216_v12 = vrot.slane %v1215_v26, 2 }
 0x132   : > { %v1189_v14 = vrot.slane %v1188_v11, 1  ;;  %v1217_v27 = vadd.f32 %v1216_v12, %v1215_v26 }
 0x134   : > { %v1218_v52 = vrot.slane %v1217_v27, 1  ;;  %v1190_v33 = vadd.f32 %v1189_v14, %v1188_v11 }
 0x136   : > { %v1219_v35 = vadd.f32 %v1218_v52, %v1217_v27 }
 0x138   : > { %v1221_v15 = vsel %vm1220_vm2, %v1190_v33, %v1219_v35 }
 0x139   : > { %1223 = vst.msk [vmem:[%s380_s30] sm:$0x3] %vm1222_vm3, %v1221_v15 }
 0x13a PF: > { %s18_s26 = sadd.s32 1, %s1577_s26   ;;  %s1997_s24 = smov %s1573_s25 }
 0x13b   : > { %p15_p5 = scmp.ge.s32.totalorder %s18_s26, 4   ;;  %s1998_s25 = smov %s2000_s27 }
 0x13d   :  { %17 = sbr.rel (!%p15_p5) target bundleno = 2 (0x2), region = 109 }

// kernel: convolutional_block_forward.4
= control target key start
LH: loop header
LB: loop body
LE: loop exit
PB: predicated region body
PF: predicated region fallthrough
CT: control target
= control target key end

     0   :  { %s2478_s24 = smov 0   ;;  %s2480_s25 = smov 0   ;;  %s3204_s0 = inlined_call_operand.vmem [shape: f32[2,10,10,4], index: 0, kind: input, shape index: {}]   ;;  %s3205_s1 = inlined_call_operand.vmem [shape: f32[10,10,1], index: 1, kind: input, shape index: {}]   ;;  %s3206_s2 = inlined_call_operand.vmem [shape: f32[1,1,4], index: 2, kind: input, shape index: {}]   ;;  %s3207_s3 = inlined_call_operand.vmem [shape: f32[1,1,4], index: 3, kind: input, shape index: {}]   ;;  %s3208_s4 = inlined_call_operand.vmem [shape: f32[9,4,8], index: 4, kind: input, shape index: {}]   ;;  %s3209_s5 = inlined_call_operand.vmem [shape: f32[1,8], index: 5, kind: input, shape index: {}]   ;;  %s3210_s6 = inlined_call_operand.vmem [shape: f32[2,64,8], index: 6, kind: output, shape index: {0}]   ;;  %s3211_s7 = inlined_call_operand.vmem [shape: f32[2,1,2,8], index: 7, kind: output, shape index: {1}]  }
   0x1   :  { %s2482_s26 = smov 0  }
   0x2 LB: > { %s30_s27 = sadd.s32 1, %s2431_s25  ;;  %p2185_p0 = scmp.ge.s32.totalorder %s2435_s26, 1  ;;  %s2435_s26 = sphi %s2482_s26, %s18_s26   ;;  %s2431_s25 = sphi %s2480_s25, %s3213_s25   ;;  %s2427_s24 = sphi %s2478_s24, %s3212_s24  }
   0x3   : > { %p32_p1 = scmp.ge.s32.totalorder %s30_s27, 2  ;;  %p256_p2 = scmp.lt.s32.totalorder %s2435_s26, 3 }
   0x5   : > { %s3215_s27 = smov (%p32_p1, %s30_s27), 0  ;;  %p257_p3 = pnand %p2185_p0, %p256_p2 }
   0x6   : > { %p299_p4 = scmp.lt.s32.totalorder (!%p257_p3), %s2427_s24, 1 }
   0x7   : > { %260 = sbr.rel (%p257_p3) target bundleno = 473 (0x1d9), region = 44 }
   0xc   : > { %v2501_v0 = vld [vmem:[%s3205_s1 + $0x40] sm:$0xff]  ;;  %v2437_v3 = vmov 0   ;;  %v2516_v4 = vld [vmem:[%s3205_s1 + $0x50] sm:$0xff]  ;;  %s3217_s24 = smov (!%p299_p4, %s2427_s24), 1  ;;  %vm569_vm0 = vcmask 1043456   ;;  %vm544_vm2 = vcmask 31744  }
   0xd   : > { %v2506_v1 = vld [vmem:[%s3205_s1 + $0x20] sm:$0xff]  ;;  %2409 = vset.pattern.permute.xlu2 %v2437_v3  ;;  %2408 = vset.pattern.permute.xlu1 %v2437_v3  ;;  %v2521_v5 = vld [vmem:[%s3205_s1 + $0x30] sm:$0xff]  ;;  %s2381_s11 = smul.u32 160, %s3217_s24  ;;  %s2189_s22 = sshll.u32 %s3217_s24, 1 }
   0xe   : > { %v335_v2 = vld [vmem:[%s3205_s1] sm:$0xff]  ;;  %2407 = vset.pattern.permute.xlu0 %v2437_v3  ;;  %411 = vperm.xlu2 %2409, %v2501_v0   ;;  %v336_v6 = vld [vmem:[%s3205_s1 + $0x10] sm:$0xff]  ;;  %s320_s29 = scalar_lea.vmem %s3211_s7, %s2189_s22 }
   0xf   : > { %401 = vperm.xlu1 %2408, %v2506_v1   ;;  %391 = vperm.xlu0 %2407, %v335_v2   ;;  %v446_v7 = vld [vmem:[%s3205_s1 + $0x1] sm:$0xff]  ;;  %v2534_v8 = vld [vmem:[%s3205_s1 + $0x70] sm:$0xff]  ;;  %s2638_s16 = scalar_lea.vmem %s3204_s0, %s2381_s11  ;;  %v2648_v26 = vld [vmem:[%s3206_s2] ss:$0 sm:$0xff] }
  0x10   : > { %v2539_v9 = vld [vmem:[%s3205_s1 + $0x60] sm:$0xff]  ;;  %v2546_v10 = vld [vmem:[%s3205_s1 + $0x31] sm:$0xff] }
  0x11   : > { %v2551_v11 = vld [vmem:[%s3205_s1 + $0x21] sm:$0xff]  ;;  %v447_v12 = vld [vmem:[%s3205_s1 + $0x11] sm:$0xff]  ;;  %v2659_v29 = vld [vmem:[%s3207_s3] ss:$0 sm:$0xff] }
  0x12   : > { %v2561_v13 = vld [vmem:[%s3205_s1 + $0x61] sm:$0xff]  ;;  %v2566_v14 = vld [vmem:[%s3205_s1 + $0x51] sm:$0xff] }
  0x13   : > { %v2571_v15 = vld [vmem:[%s3205_s1 + $0x41] sm:$0xff]  ;;  %v2579_v16 = vld [vmem:[%s3205_s1 + $0x12] sm:$0xff] }
  0x14   : > { %v690_v17 = vld [vmem:[%s3205_s1 + $0x2] sm:$0xff]  ;;  %v2587_v18 = vld [vmem:[%s3205_s1 + $0x71] sm:$0xff] }
  0x15   : > { %v2594_v19 = vld [vmem:[%s3205_s1 + $0x32] sm:$0xff]  ;;  %v2599_v20 = vld [vmem:[%s3205_s1 + $0x22] sm:$0xff] }
  0x16   : > { %416 = vperm.xlu2 %2409, %v2516_v4   ;;  %v2611_v21 = vld [vmem:[%s3205_s1 + $0x42] sm:$0xff]  ;;  %v2620_v22 = vld [vmem:[%s3205_s1 + $0x52] sm:$0xff] }
  0x17   : > { %406 = vperm.xlu1 %2408, %v2521_v5   ;;  %396 = vperm.xlu0 %2407, %v336_v6   ;;  %v2632_v23 = vld [vmem:[%s3205_s1 + $0x62] sm:$0xff]  ;;  %v2669_v31 = vld [vmem:[%s3205_s1 + $0x72] sm:$0xff] }
  0x18   : > { %v438_v24 = vld [vmem:[%s2638_s16 + $0x1] sm:$0xff]  ;;  %v439_v49 = vld [vmem:[%s2638_s16 + $0x11] sm:$0xff] }
  0x19   : > { %v454_v27 = vmul.f32 %v2648_v26, %v438_v24  ;;  %v2190_v28 = vld [vmem:[%s3208_s4 + $0x4] sm:$0xf]  ;;  %v437_v53 = vld [vmem:[%s3208_s4] sm:$0xf]  ;;  %v455_v55 = vmul.f32 %v2648_v26, %v439_v49  ;;  %v441_v56 = vld [vmem:[%s2638_s16 + $0x31] sm:$0xff] }
  0x1a   : > { %2191 = vmatpush.msk.msra.mxu0 %vm569_vm0, %v2190_v28  ;;  %2380 = vmatpush.msk.msra.mxu3 %vm569_vm0, %v2190_v28  ;;  %v2664_v30 = vld [vmem:[%s3205_s1 + $0x80] sm:$0xff]  ;;  %v457_v63 = vmul.f32 %v2648_v26, %v441_v56 }
  0x1b   : > { %2378 = vmatpush.msk.msra.mxu1 %vm569_vm0, %v2190_v28  ;;  %2379 = vmatpush.msk.msra.mxu2 %vm569_vm0, %v2190_v28  ;;  %v462_v32 = vadd.f32 %v2659_v29, %v454_v27  ;;  %v2682_v35 = vld [vmem:[%s3205_s1 + $0x81] sm:$0xff]  ;;  %v463_v58 = vadd.f32 %v2659_v29, %v455_v55 }
  0x1c   : > { %v444_v37 = vld [vmem:[%s2638_s16 + $0x61] sm:$0xff] }
  0x1d   : > { %v478_v34 = vmul.f32 0.2, %v462_v32  ;;  %vm470_vm1 = vcmp.ge.f32.partialorder %v462_v32, 0.0  ;;  %v460_v40 = vmul.f32 %v2648_v26, %v444_v37  ;;  %v440_v48 = vld [vmem:[%s2638_s16 + $0x21] sm:$0xff]  ;;  %2200 = vmatpush.msk.msrb.mxu1 %vm569_vm0, %v437_v53  ;;  %v479_v3 = vmul.f32 0.2, %v463_v58 }
  0x1e   : > { %496 = vperm.xlu2 %2409, %v446_v7   ;;  %v456_v54 = vmul.f32 %v2648_v26, %v440_v48  ;;  %v442_v60 = vld [vmem:[%s2638_s16 + $0x41] sm:$0xff]  ;;  %vm471_vm5 = vcmp.ge.f32.partialorder %v463_v58, 0.0  ;;  %v327_v48 = vld [vmem:[%s2638_s16 + $0x10] sm:$0xff]  ;;  %v2313_v53 = vld [vmem:[%s3208_s4 + $0x18] sm:$0xf] }
  0x1f   : > { %426 = vperm.xlu1 %2408, %v2534_v8   ;;  %421 = vperm.xlu0 %2407, %v2539_v9   ;;  %v486_v36 = vsel %vm470_vm1, %v462_v32, %v478_v34  ;;  %v468_v41 = vadd.f32 %v2659_v29, %v460_v40 }
  0x20   : > { %v464_v57 = vadd.f32 %v2659_v29, %v456_v54 }
  0x21   : > { %v484_v45 = vmul.f32 0.2, %v468_v41  ;;  %vm476_vm3 = vcmp.ge.f32.partialorder %v468_v41, 0.0 }
  0x22   : > { %v480_v2 = vmul.f32 0.2, %v464_v57  ;;  %vm472_vm4 = vcmp.ge.f32.partialorder %v464_v57, 0.0 }
  0x23   : > { %v2701_v46 = vsel %vm476_vm3, %v468_v41, %v484_v45 }
  0x24   : > { %v2746_v7 = vsel %vm472_vm4, %v464_v57, %v480_v2 }
  0x26   : > { %511 = vperm.xlu2 %2409, %v2546_v10  }
  0x27   : > { %506 = vperm.xlu1 %2408, %v2551_v11   ;;  %501 = vperm.xlu0 %2407, %v447_v12  }
  0x2e   : > { %526 = vperm.xlu2 %2409, %v2561_v13  }
  0x2f   : > { %521 = vperm.xlu1 %2408, %v2566_v14   ;;  %516 = vperm.xlu0 %2407, %v2571_v15  }
  0x36   : > { %745 = vperm.xlu2 %2409, %v2579_v16  }
  0x37   : > { %740 = vperm.xlu1 %2408, %v690_v17   ;;  %531 = vperm.xlu0 %2407, %v2587_v18   ;;  %v326_v17 = vld [vmem:[%s2638_s16] sm:$0xff] }
  0x3e   : > { %926 = vperm.xlu2 %2409, %v336_v6   ;;  %v465_v6 = vadd.f32 %v2659_v29, %v457_v63  ;;  %v683_v63 = vld [vmem:[%s2638_s16 + $0x12] sm:$0xff] }
  0x3f   : > { %755 = vperm.xlu1 %2408, %v2594_v19   ;;  %750 = vperm.xlu0 %2407, %v2599_v20  }
  0x40   : > { %v481_v24 = vmul.f32 0.2, %v465_v6  ;;  %vm473_vm6 = vcmp.ge.f32.partialorder %v465_v6, 0.0 }
  0x42   : > { %v2767_v37 = vsel %vm473_vm6, %v465_v6, %v481_v24  ;;  %v328_v6 = vld [vmem:[%s2638_s16 + $0x20] sm:$0xff] }
  0x43   : > { %v885_v24 = vmul.f32 %v2648_v26, %v328_v6 }
  0x46   : > { %936 = vperm.xlu2 %2409, %v2521_v5  }
  0x47   : > { %1108 = vperm.xlu1 %2408, %v447_v12   ;;  %931 = vperm.xlu0 %2407, %v2506_v1  }
  0x4e   : > { %1118 = vperm.xlu2 %2409, %v2546_v10  }
  0x4f   : > { %941 = vperm.xlu1 %2408, %v2501_v0   ;;  %1113 = vperm.xlu0 %2407, %v2551_v11  }
  0x56   : > { %1123 = vperm.xlu2 %2409, %v2571_v15  }
  0x57   : > { %946 = vperm.xlu1 %2408, %v2516_v4   ;;  %760 = vperm.xlu0 %2407, %v2611_v21  }
  0x5e   : > { %1128 = vperm.xlu2 %2409, %v2566_v14  }
  0x5f   : > { %951 = vperm.xlu1 %2408, %v2539_v9   ;;  %765 = vperm.xlu0 %2407, %v2620_v22  }
  0x66   : > { %1133 = vperm.xlu2 %2409, %v2561_v13  }
  0x67   : > { %956 = vperm.xlu1 %2408, %v2534_v8   ;;  %770 = vperm.xlu0 %2407, %v2632_v23  }
  0x68   : > { %v2643_v25 = vpop.permute.xlu2 %411 }
  0x6e   : > { %1138 = vperm.xlu2 %2409, %v2587_v18  }
  0x6f   : > { %961 = vperm.xlu1 %2408, %v2664_v30   ;;  %775 = vperm.xlu0 %2407, %v2669_v31  }
  0x70   : > { %v2677_v33 = vpop.permute.xlu2 %416 }
  0x76   : > { %1658 = vperm.xlu2 %2409, %v2551_v11  }
  0x77   : > { %1143 = vperm.xlu1 %2408, %v2682_v35   ;;  %1476 = vperm.xlu0 %2407, %v2506_v1   ;;  %v2235_v1 = vld [vmem:[%s3208_s4 + $0xc] sm:$0xf] }
  0x78   : > { %v497_v38 = vpop.permute.xlu2 %496  ;;  %2236 = vmatpush.msk.msrb.mxu3 %vm569_vm0, %v2235_v1 }
  0x79   : > { %v534_v39 = vmul.f32 %v497_v38, %v486_v36  ;;  %v346_v36 = vmul.f32 %v2648_v26, %v326_v17 }
  0x7b   : > { %2192 = vmatmul.msk.f32.vlgmr.msra.gmra.mxu0 %vm544_vm2, %v534_v39  ;;  %v357_v41 = vadd.f32 %v2659_v29, %v346_v36  ;;  %v684_v36 = vld [vmem:[%s2638_s16 + $0x22] sm:$0xff] }
  0x7d   : > { %v373_v57 = vmul.f32 0.2, %v357_v41  ;;  %vm365_vm10 = vcmp.ge.f32.partialorder %v357_v41, 0.0 }
  0x7e   : > { %1663 = vperm.xlu2 %2409, %v2546_v10   ;;  %v2748_v10 = vsel %vm471_vm5, %v463_v58, %v479_v3  ;;  %v2287_v58 = vld [vmem:[%s3208_s4 + $0x14] sm:$0xf] }
  0x7f   : > { %1481 = vperm.xlu1 %2408, %v2521_v5   ;;  %1290 = vperm.xlu0 %2407, %v2579_v16   ;;  %v458_v5 = vmul.f32 %v2648_v26, %v442_v60  ;;  %v445_v16 = vld [vmem:[%s2638_s16 + $0x71] sm:$0xff]  ;;  %v381_v3 = vsel %vm365_vm10, %v357_v41, %v373_v57 }
  0x80   : > { %v2694_v42 = vpop.permute.xlu2 %511  ;;  %v461_v34 = vmul.f32 %v2648_v26, %v445_v16 }
  0x81   : > { %v2696_v43 = vpop.permute.xlu1 %401  ;;  %v2698_v44 = vpop.permute.xlu0 %391  ;;  %v466_v11 = vadd.f32 %v2659_v29, %v458_v5 }
  0x82   : > { %v469_v40 = vadd.f32 %v2659_v29, %v461_v34 }
  0x83   : > { %v482_v32 = vmul.f32 0.2, %v466_v11  ;;  %vm474_vm7 = vcmp.ge.f32.partialorder %v466_v11, 0.0 }
  0x84   : > { %v485_v56 = vmul.f32 0.2, %v469_v40  ;;  %vm477_vm9 = vcmp.ge.f32.partialorder %v469_v40, 0.0 }
  0x85   : > { %v2773_v39 = vsel %vm474_vm7, %v466_v11, %v482_v32  ;;  %v329_v32 = vld [vmem:[%s2638_s16 + $0x30] sm:$0xff] }
  0x86   : > { %1486 = vperm.xlu2 %2409, %v2501_v0   ;;  %v2209_v0 = vld [vmem:[%s3208_s4 + $0x8] sm:$0xf]  ;;  %v2807_v2 = vsel %vm477_vm9, %v469_v40, %v485_v56 }
  0x87   : > { %1295 = vperm.xlu1 %2408, %v2599_v20   ;;  %1840 = vperm.xlu0 %2407, %v2599_v20  }
  0x88   : > { %v527_v47 = vpop.permute.xlu2 %526  ;;  %2210 = vmatpush.msk.msrb.mxu2 %vm569_vm0, %v2209_v0 }
  0x89   : > { %v540_v50 = vmul.f32 %v527_v47, %v2701_v46  ;;  %v2708_v51 = vpop.permute.xlu1 %406  ;;  %v2710_v52 = vpop.permute.xlu0 %396  ;;  %v682_v47 = vld [vmem:[%s2638_s16 + $0x2] sm:$0xff] }
  0x8a   : > { %v698_v55 = vmul.f32 %v2648_v26, %v682_v47 }
  0x8b   : > { %2198 = vmatmul.msk.f32.vlgmr.msra.gmra.mxu3 %vm544_vm2, %v540_v50 }
  0x8c   : > { %v706_v1 = vadd.f32 %v2659_v29, %v698_v55 }
  0x8e   : > { %1300 = vperm.xlu2 %2409, %v2594_v19   ;;  %vm714_vm12 = vcmp.ge.f32.partialorder %v706_v1, 0.0 }
  0x8f   : > { %1845 = vperm.xlu1 %2408, %v2594_v19   ;;  %1668 = vperm.xlu0 %2407, %v2571_v15   ;;  %v443_v15 = vld [vmem:[%s2638_s16 + $0x51] sm:$0xff] }
  0x90   : > { %v2725_v59 = vpop.permute.xlu2 %745  ;;  %v459_v28 = vmul.f32 %v2648_v26, %v443_v15  ;;  %v699_v15 = vmul.f32 %v2648_v26, %v683_v63 }
  0x91   : > { %v2728_v61 = vpop.permute.xlu1 %426  ;;  %v2730_v62 = vpop.permute.xlu0 %421 }
  0x92   : > { %v467_v38 = vadd.f32 %v2659_v29, %v459_v28  ;;  %v893_v28 = vadd.f32 %v2659_v29, %v885_v24 }
  0x94   : > { %v483_v54 = vmul.f32 0.2, %v467_v38  ;;  %vm475_vm8 = vcmp.ge.f32.partialorder %v467_v38, 0.0  ;;  %vm901_vm14 = vcmp.ge.f32.partialorder %v893_v28, 0.0 }
  0x96   : > { %1850 = vperm.xlu2 %2409, %v2611_v21   ;;  %v2802_v0 = vsel %vm475_vm8, %v467_v38, %v483_v54  ;;  %v886_v38 = vmul.f32 %v2648_v26, %v329_v32 }
  0x97   : > { %1673 = vperm.xlu1 %2408, %v2566_v14   ;;  %1491 = vperm.xlu0 %2407, %v2516_v4   ;;  %v2261_v4 = vld [vmem:[%s3208_s4 + $0x10] sm:$0xf] }
  0x98   : > { %v2751_v12 = vpop.permute.xlu2 %926  ;;  %2262 = vmatpush.msk.msrb.mxu0 %vm569_vm0, %v2261_v4 }
  0x99   : > { %v507_v19 = vpop.permute.xlu1 %506  ;;  %v502_v20 = vpop.permute.xlu0 %501 }
  0x9a   : > { %v536_v27 = vmul.f32 %v507_v19, %v2746_v7  ;;  %v535_v14 = vmul.f32 %v502_v20, %v2748_v10  ;;  %v722_v20 = vmul.f32 0.2, %v706_v1 }
  0x9c   : > { %2193 = vmatmul.msk.f32.gmra.mxu0 %vm544_vm2, %v535_v14  ;;  %2194 = vmatmul.msk.f32.vlgmr.msra.gmra.mxu1 %vm544_vm2, %v536_v27  ;;  %v2365_v27 = vld [vmem:[%s3208_s4 + $0x20] sm:$0xf]  ;;  %v730_v4 = vsel %vm714_vm12, %v706_v1, %v722_v20 }
  0x9d   : > { %2288 = vmatpush.msk.msra.mxu1 %vm569_vm0, %v2287_v58  ;;  %2366 = vmatpush.msk.msra.mxu0 %vm569_vm0, %v2365_v27 }
  0x9e   : > { %1678 = vperm.xlu2 %2409, %v2561_v13   ;;  %v537_v13 = vmul.f32 %v2694_v42, %v2767_v37  ;;  %v2339_v42 = vld [vmem:[%s3208_s4 + $0x1c] sm:$0xf] }
  0x9f   : > { %1496 = vperm.xlu1 %2408, %v2539_v9   ;;  %1305 = vperm.xlu0 %2407, %v2611_v21   ;;  %v884_v9 = vmul.f32 %v2648_v26, %v327_v48 }
  0xa0   : > { %v2777_v45 = vpop.permute.xlu2 %936  ;;  %2340 = vmatpush.msk.msra.mxu3 %vm569_vm0, %v2339_v42 }
  0xa1   : > { %v522_v49 = vpop.permute.xlu1 %521  ;;  %v517_v50 = vpop.permute.xlu0 %516  ;;  %v892_v60 = vadd.f32 %v2659_v29, %v884_v9  ;;  %v330_v9 = vld [vmem:[%s2638_s16 + $0x40] sm:$0xff] }
  0xa2   : > { %v538_v21 = vmul.f32 %v517_v50, %v2773_v39  ;;  %v539_v16 = vmul.f32 %v522_v49, %v2802_v0  ;;  %v909_v50 = vmul.f32 0.2, %v893_v28  ;;  %v350_v55 = vmul.f32 %v2648_v26, %v330_v9 }
  0xa3   : > { %v908_v19 = vmul.f32 0.2, %v892_v60  ;;  %vm900_vm11 = vcmp.ge.f32.partialorder %v892_v60, 0.0 }
  0xa4   : > { %2195 = vmatmul.msk.f32.gmra.mxu1 %vm544_vm2, %v537_v13  ;;  %2196 = vmatmul.msk.f32.vlgmr.msra.gmra.mxu2 %vm544_vm2, %v538_v21  ;;  %v894_v13 = vadd.f32 %v2659_v29, %v886_v38  ;;  %v2851_v21 = vsel %vm901_vm14, %v893_v28, %v909_v50 }
  0xa5   : > { %2314 = vmatpush.msk.msra.mxu2 %vm569_vm0, %v2313_v53  ;;  %v916_v14 = vsel %vm900_vm11, %v892_v60, %v908_v19  ;;  %v685_v53 = vld [vmem:[%s2638_s16 + $0x32] sm:$0xff] }
  0xa6   : > { %1501 = vperm.xlu2 %2409, %v2534_v8   ;;  %v964_v47 = vmul.f32 %v2751_v12, %v916_v14  ;;  %v430_v49 = vmul.f32 %v916_v14, %v2710_v52  ;;  %v910_v56 = vmul.f32 0.2, %v894_v13  ;;  %vm902_vm15 = vcmp.ge.f32.partialorder %v894_v13, 0.0 }
  0xa7   : > { %1310 = vperm.xlu1 %2408, %v2620_v22   ;;  %1855 = vperm.xlu0 %2407, %v2620_v22   ;;  %v429_v22 = vmul.f32 %v2698_v44, %v381_v3  ;;  %v707_v44 = vadd.f32 %v2659_v29, %v699_v15  ;;  %v701_v63 = vmul.f32 %v2648_v26, %v685_v53  ;;  %v2338_v3 = vld [vmem:[%s3205_s1 + $0x91] sm:$0xff]  ;;  %v686_v15 = vld [vmem:[%s2638_s16 + $0x42] sm:$0xff] }
  0xa8   : > { %v2809_v5 = vpop.permute.xlu2 %1118  ;;  %v2876_v6 = vsel %vm902_vm15, %v894_v13, %v910_v56  ;;  %v702_v28 = vmul.f32 %v2648_v26, %v686_v15 }
  0xa9   : > { %v741_v8 = vpop.permute.xlu1 %740  ;;  %v532_v11 = vpop.permute.xlu0 %531  ;;  %vm715_vm13 = vcmp.ge.f32.partialorder %v707_v44, 0.0  ;;  %v966_v20 = vmul.f32 %v2777_v45, %v2876_v6  ;;  %v2286_v45 = vld [vmem:[%s3205_s1 + $0x82] sm:$0xff] }
  0xaa   : > { %v541_v17 = vmul.f32 %v532_v11, %v2807_v2  ;;  %v778_v48 = vmul.f32 %v741_v8, %v730_v4  ;;  %v709_v8 = vadd.f32 %v2659_v29, %v701_v63  ;;  %v2364_v4 = vld [vmem:[%s3205_s1 + $0x92] sm:$0xff] }
  0xac   : > { %2197 = vmatmul.msk.f32.gmra.mxu2 %vm544_vm2, %v539_v16  ;;  %2199 = vmatmul.msk.f32.gmra.mxu3 %vm544_vm2, %v541_v17  ;;  %v725_v14 = vmul.f32 0.2, %v709_v8  ;;  %vm717_vm3 = vcmp.ge.f32.partialorder %v709_v8, 0.0 }
  0xad   : > { %2201 = vmatmul.msk.f32.vlgmr.msrb.gmra.mxu1 %vm544_vm2, %v429_v22 }
  0xae   : > { %1315 = vperm.xlu2 %2409, %v2632_v23   ;;  %v2908_v38 = vsel %vm717_vm3, %v709_v8, %v725_v14  ;;  %vm2035_vm3 = vcmask 1040384  }
  0xaf   : > { %1860 = vperm.xlu1 %2408, %v2632_v23   ;;  %1683 = vperm.xlu0 %2407, %v2587_v18   ;;  %v723_v23 = vmul.f32 0.2, %v707_v44  ;;  %v700_v18 = vmul.f32 %v2648_v26, %v684_v36  ;;  %v332_v36 = vld [vmem:[%s2638_s16 + $0x60] sm:$0xff] }
  0xb0   : > { %v2831_v34 = vpop.permute.xlu2 %1123 }
  0xb1   : > { %v2835_v40 = vpop.permute.xlu1 %755  ;;  %v751_v41 = vpop.permute.xlu0 %750  ;;  %v2846_v12 = vsel %vm715_vm13, %v707_v44, %v723_v23  ;;  %v708_v52 = vadd.f32 %v2659_v29, %v700_v18 }
  0xb2   : > { %v779_v58 = vmul.f32 %v2725_v59, %v2846_v12  ;;  %v2312_v59 = vld [vmem:[%s3205_s1 + $0x90] sm:$0xff]  ;;  %v781_v13 = vmul.f32 %v2835_v40, %v2908_v38 }
  0xb3   : > { %v724_v1 = vmul.f32 0.2, %v708_v52  ;;  %vm716_vm0 = vcmp.ge.f32.partialorder %v708_v52, 0.0 }
  0xb4   : > { %2211 = vmatmul.msk.f32.vlgmr.msrb.gmra.mxu2 %vm544_vm2, %v778_v48  ;;  %2237 = vmatmul.msk.f32.vlgmr.msrb.gmra.mxu3 %vm544_vm2, %v964_v47  ;;  %v687_v47 = vld [vmem:[%s2638_s16 + $0x52] sm:$0xff] }
  0xb5   : > { %2202 = vmatmul.msk.f32.gmra.mxu1 %vm544_vm2, %v430_v49  ;;  %v2879_v11 = vsel %vm716_vm0, %v708_v52, %v724_v1  ;;  %v352_v49 = vmul.f32 %v2648_v26, %v332_v36  ;;  %v1148_v52 = vmul.f32 %v2809_v5, %v2767_v37 }
  0xb6   : > { %1865 = vperm.xlu2 %2409, %v2669_v31   ;;  %v780_v24 = vmul.f32 %v751_v41, %v2879_v11  ;;  %v710_v41 = vadd.f32 %v2659_v29, %v702_v28 }
  0xb7   : > { %1688 = vperm.xlu1 %2408, %v2682_v35   ;;  %1506 = vperm.xlu0 %2407, %v2664_v30   ;;  %v431_v30 = vmul.f32 %v2851_v21, %v2696_v43  ;;  %v331_v43 = vld [vmem:[%s2638_s16 + $0x50] sm:$0xff] }
  0xb8   : > { %v2854_v54 = vpop.permute.xlu2 %1128  ;;  %v351_v17 = vmul.f32 %v2648_v26, %v331_v43  ;;  %v726_v53 = vmul.f32 0.2, %v710_v41  ;;  %vm718_vm5 = vcmp.ge.f32.partialorder %v710_v41, 0.0 }
  0xb9   : > { %v1109_v57 = vpop.permute.xlu1 %1108  ;;  %v932_v42 = vpop.permute.xlu0 %931  ;;  %v1150_v28 = vmul.f32 %v2854_v54, %v2802_v0 }
  0xba   : > { %v1146_v60 = vmul.f32 %v1109_v57, %v2748_v10  ;;  %v965_v35 = vmul.f32 %v932_v42, %v2851_v21  ;;  %v361_v10 = vadd.f32 %v2659_v29, %v350_v55  ;;  %v362_v32 = vadd.f32 %v2659_v29, %v351_v17  ;;  %v688_v42 = vld [vmem:[%s2638_s16 + $0x62] sm:$0xff] }
  0xbb   : > { %v703_v55 = vmul.f32 %v2648_v26, %v687_v47  ;;  %v2929_v57 = vsel %vm718_vm5, %v710_v41, %v726_v53  ;;  %v704_v8 = vmul.f32 %v2648_v26, %v688_v42 }
  0xbc   : > { %2212 = vmatmul.msk.f32.gmra.mxu2 %vm544_vm2, %v779_v58  ;;  %2238 = vmatmul.msk.f32.gmra.mxu3 %vm544_vm2, %v965_v35  ;;  %vm369_vm1 = vcmp.ge.f32.partialorder %v361_v10, 0.0  ;;  %v377_v16 = vmul.f32 0.2, %v361_v10  ;;  %vm370_vm4 = vcmp.ge.f32.partialorder %v362_v32, 0.0  ;;  %v378_v48 = vmul.f32 0.2, %v362_v32 }
  0xbd   : > { %2203 = vmatmul.msk.f32.gmra.mxu1 %vm544_vm2, %v431_v30  ;;  %2263 = vmatmul.msk.f32.vlgmr.msrb.gmra.mxu0 %vm544_vm2, %v1146_v60  ;;  %v711_v5 = vadd.f32 %v2659_v29, %v703_v55  ;;  %v333_v58 = vld [vmem:[%s2638_s16 + $0x70] sm:$0xff]  ;;  %v712_v17 = vadd.f32 %v2659_v29, %v704_v8 }
  0xbe   : > { %1693 = vperm.xlu2 %2409, %v2338_v3   ;;  %v386_v40 = vsel %vm370_vm4, %v362_v32, %v378_v48  ;;  %vm2037_vm4 = vcmask 58368  }
  0xbf   : > { %1511 = vperm.xlu1 %2408, %v2312_v59   ;;  %1320 = vperm.xlu0 %2407, %v2669_v31   ;;  %v432_v31 = vmul.f32 %v2876_v6, %v2708_v51  ;;  %v2905_v51 = vsel %vm369_vm1, %v361_v10, %v377_v16  ;;  %v434_v63 = vmul.f32 %v2677_v33, %v386_v40  ;;  %v727_v43 = vmul.f32 0.2, %v711_v5 }
  0xc0   : > { %v2887_v27 = vpop.permute.xlu2 %1133  ;;  %v433_v50 = vmul.f32 %v2643_v25, %v2905_v51  ;;  %v363_v25 = vadd.f32 %v2659_v29, %v352_v49  ;;  %v890_v59 = vmul.f32 %v2648_v26, %v333_v58  ;;  %v1149_v10 = vmul.f32 %v2831_v34, %v2773_v39 }
  0xc1   : > { %v942_v22 = vpop.permute.xlu1 %941  ;;  %v1114_v19 = vpop.permute.xlu0 %1113  ;;  %vm719_vm7 = vcmp.ge.f32.partialorder %v711_v5, 0.0  ;;  %vm720_vm9 = vcmp.ge.f32.partialorder %v712_v17, 0.0 }
  0xc2   : > { %v1147_v44 = vmul.f32 %v1114_v19, %v2746_v7  ;;  %v967_v9 = vmul.f32 %v942_v22, %v2905_v51  ;;  %v379_v60 = vmul.f32 0.2, %v363_v25  ;;  %vm371_vm6 = vcmp.ge.f32.partialorder %v363_v25, 0.0  ;;  %v2226_v22 = vld [vmem:[%s2638_s16 + $0x80] sm:$0xff]  ;;  %v689_v19 = vld [vmem:[%s2638_s16 + $0x72] sm:$0xff] }
  0xc3   : > { %v898_v15 = vadd.f32 %v2659_v29, %v890_v59  ;;  %v2949_v34 = vsel %vm719_vm7, %v711_v5, %v727_v43  ;;  %v891_v32 = vmul.f32 %v2648_v26, %v2226_v22  ;;  %v705_v36 = vmul.f32 %v2648_v26, %v689_v19 }
  0xc4   : > { %2213 = vmatmul.msk.f32.gmra.mxu2 %vm544_vm2, %v780_v24  ;;  %2239 = vmatmul.msk.f32.gmra.mxu3 %vm544_vm2, %v966_v20  ;;  %v2947_v16 = vsel %vm371_vm6, %v363_v25, %v379_v60 }
  0xc5   : > { %2204 = vmatmul.msk.f32.gmra.mxu1 %vm544_vm2, %v432_v31  ;;  %2264 = vmatmul.msk.f32.gmra.mxu0 %vm544_vm2, %v1147_v44  ;;  %v435_v44 = vmul.f32 %v2730_v62, %v2947_v16  ;;  %vm906_vm8 = vcmp.ge.f32.partialorder %v898_v15, 0.0  ;;  %v899_v54 = vadd.f32 %v2659_v29, %v891_v32  ;;  %v713_v47 = vadd.f32 %v2659_v29, %v705_v36 }
  0xc6   : > { %1875 = vperm.xlu2 %2409, %v2364_v4   ;;  %v914_v4 = vmul.f32 0.2, %v898_v15 }
  0xc7   : > { %1325 = vperm.xlu1 %2408, %v2286_v45   ;;  %1870 = vperm.xlu0 %2407, %v2286_v45   ;;  %v728_v45 = vmul.f32 0.2, %v712_v17  ;;  %v915_v53 = vmul.f32 0.2, %v899_v54  ;;  %v729_v55 = vmul.f32 0.2, %v713_v47 }
  0xc8   : > { %v2921_v56 = vpop.permute.xlu2 %1138  ;;  %v2966_v62 = vsel %vm906_vm8, %v898_v15, %v914_v4  ;;  %vm907_vm10 = vcmp.ge.f32.partialorder %v899_v54, 0.0  ;;  %vm721_vm11 = vcmp.ge.f32.partialorder %v713_v47, 0.0 }
  0xc9   : > { %v947_v23 = vpop.permute.xlu1 %946  ;;  %v761_v18 = vpop.permute.xlu0 %760  ;;  %v2968_v41 = vsel %vm720_vm9, %v712_v17, %v728_v45  ;;  %v2300_v17 = vld [vmem:[%s2638_s16 + $0x50] sm:$0xff] }
  0xca   : > { %v968_v1 = vmul.f32 %v947_v23, %v386_v40  ;;  %v782_v3 = vmul.f32 %v761_v18, %v2929_v57  ;;  %v2252_v18 = vld [vmem:[%s2638_s16 + $0x81] sm:$0xff]  ;;  %v2984_v40 = vsel %vm907_vm10, %v899_v54, %v915_v53 }
  0xcb   : > { %v1073_v25 = vmul.f32 %v2648_v26, %v2252_v18 }
  0xcc   : > { %2214 = vmatmul.msk.f32.gmra.mxu2 %vm544_vm2, %v781_v13  ;;  %2240 = vmatmul.msk.f32.gmra.mxu3 %vm544_vm2, %v967_v9  ;;  %v436_v9 = vmul.f32 %v2966_v62, %v2728_v61  ;;  %v2986_v61 = vsel %vm721_vm11, %v713_v47, %v729_v55  ;;  %v2330_v55 = vld [vmem:[%s2638_s16 + $0x91] sm:$0xff] }
  0xcd   : > { %2205 = vmatmul.msk.f32.gmra.mxu1 %vm544_vm2, %v433_v50  ;;  %2265 = vmatmul.msk.f32.gmra.mxu0 %vm544_vm2, %v1148_v52  ;;  %v1151_v52 = vmul.f32 %v2887_v27, %v2701_v46  ;;  %v1081_v27 = vadd.f32 %v2659_v29, %v1073_v25 }
  0xcf   : > { %vm1089_vm12 = vcmp.ge.f32.partialorder %v1081_v27, 0.0 }
  0xd0   : > { %v2944_v33 = vpop.permute.xlu2 %1658 }
  0xd1   : > { %v952_v35 = vpop.permute.xlu1 %951  ;;  %v766_v30 = vpop.permute.xlu0 %765 }
  0xd2   : > { %v969_v31 = vmul.f32 %v952_v35, %v2947_v16  ;;  %v783_v14 = vmul.f32 %v766_v30, %v2949_v34  ;;  %v1152_v30 = vmul.f32 %v2921_v56, %v2807_v2  ;;  %v1696_v56 = vmul.f32 %v2944_v33, %v2746_v7 }
  0xd4   : > { %2215 = vmatmul.msk.f32.gmra.mxu2 %vm544_vm2, %v782_v3  ;;  %2241 = vmatmul.msk.f32.gmra.mxu3 %vm544_vm2, %v968_v1 }
  0xd5   : > { %2206 = vmatmul.msk.f32.gmra.mxu1 %vm544_vm2, %v434_v63  ;;  %2266 = vmatmul.msk.f32.gmra.mxu0 %vm544_vm2, %v1149_v10  ;;  %v1097_v63 = vmul.f32 0.2, %v1081_v27 }
  0xd7   : > { %v2996_v1 = vsel %vm1089_vm12, %v1081_v27, %v1097_v63 }
  0xd8   : > { %v1664_v48 = vpop.permute.xlu2 %1663 }
  0xd9   : > { %v957_v20 = vpop.permute.xlu1 %956  ;;  %v771_v24 = vpop.permute.xlu0 %770  ;;  %v1697_v33 = vmul.f32 %v1664_v48, %v2767_v37 }
  0xda   : > { %v970_v50 = vmul.f32 %v957_v20, %v2966_v62  ;;  %v784_v13 = vmul.f32 %v771_v24, %v2968_v41  ;;  %v1437_v20 = vmul.f32 %v2648_v26, %v2300_v17 }
  0xdc   : > { %2216 = vmatmul.msk.f32.gmra.mxu2 %vm544_vm2, %v783_v14  ;;  %2242 = vmatmul.msk.f32.gmra.mxu3 %vm544_vm2, %v969_v31 }
  0xdd   : > { %2207 = vmatmul.msk.f32.gmra.mxu1 %vm544_vm2, %v435_v44  ;;  %2267 = vmatmul.msk.f32.gmra.mxu0 %vm544_vm2, %v1150_v28  ;;  %v1445_v44 = vadd.f32 %v2659_v29, %v1437_v20 }
  0xdf   : > { %v1461_v28 = vmul.f32 0.2, %v1445_v44  ;;  %vm1453_vm13 = vcmp.ge.f32.partialorder %v1445_v44, 0.0 }
  0xe0   : > { %v1487_v58 = vpop.permute.xlu2 %1486 }
  0xe1   : > { %v962_v49 = vpop.permute.xlu1 %961  ;;  %v776_v23 = vpop.permute.xlu0 %775  ;;  %v1516_v14 = vmul.f32 %v1487_v58, %v2905_v51  ;;  %v1469_v45 = vsel %vm1453_vm13, %v1445_v44, %v1461_v28 }
  0xe2   : > { %v971_v60 = vmul.f32 %v962_v49, %v2984_v40  ;;  %v785_v35 = vmul.f32 %v776_v23, %v2986_v61 }
  0xe4   : > { %2217 = vmatmul.msk.f32.gmra.mxu2 %vm544_vm2, %v784_v13  ;;  %2243 = vmatmul.msk.f32.gmra.mxu3 %vm544_vm2, %v970_v50 }
  0xe5   : > { %2208 = vmatmul.msk.f32.gmra.mxu1 %vm544_vm2, %v436_v9  ;;  %2268 = vmatmul.msk.f32.gmra.mxu0 %vm544_vm2, %v1151_v52 }
  0xe8   : > { %v1301_v15 = vpop.permute.xlu2 %1300 }
  0xe9   : > { %v1144_v5 = vpop.permute.xlu1 %1143  ;;  %v1477_v42 = vpop.permute.xlu0 %1476 }
  0xea   : > { %v1514_v10 = vmul.f32 %v1477_v42, %v2851_v21  ;;  %v1153_v8 = vmul.f32 %v1144_v5, %v2996_v1 }
  0xec   : > { %2218 = vmatmul.msk.f32.gmra.mxu2 %vm544_vm2, %v785_v35  ;;  %2244 = vmatmul.msk.f32.gmra.mxu3 %vm544_vm2, %v971_v60  ;;  %v1623_v60 = vmul.f32 %v2648_v26, %v2330_v55 }
  0xed   : > { %2269 = vmatmul.msk.f32.gmra.mxu0 %vm544_vm2, %v1152_v30 }
  0xf0   : > { %v1851_v24 = vpop.permute.xlu2 %1850 }
  0xf1   : > { %v1482_v3 = vpop.permute.xlu1 %1481  ;;  %v1291_v59 = vpop.permute.xlu0 %1290 }
  0xf2   : > { %v1328_v43 = vmul.f32 %v1291_v59, %v2846_v12  ;;  %v1515_v21 = vmul.f32 %v1482_v3, %v2876_v6  ;;  %v2278_v3 = vld [vmem:[%s2638_s16 + $0x82] sm:$0xff] }
  0xf4   : > { %2289 = vmatmul.msk.f32.vlgmr.msra.gmra.mxu1 %vm544_vm2, %v1328_v43  ;;  %2315 = vmatmul.msk.f32.vlgmr.msra.gmra.mxu2 %vm544_vm2, %v1514_v10 }
  0xf5   : > { %2270 = vmatmul.msk.f32.gmra.mxu0 %vm544_vm2, %v1153_v8  ;;  %2341 = vmatmul.msk.f32.vlgmr.msra.gmra.mxu3 %vm544_vm2, %v1696_v56 }
  0xf8   : > { %v1679_v32 = vpop.permute.xlu2 %1678  ;;  %v3064_v43 = vpop.f32.mrf.mxu0 }
  0xf9   : > { %v1296_v22 = vpop.permute.xlu1 %1295  ;;  %v1841_v19 = vpop.permute.xlu0 %1840 }
  0xfa   : > { %v1329_v12 = vmul.f32 %v1296_v22, %v2879_v11  ;;  %v1878_v7 = vmul.f32 %v1841_v19, %v2879_v11  ;;  %v1330_v11 = vmul.f32 %v1301_v15, %v2908_v38  ;;  %v1255_v19 = vmul.f32 %v2648_v26, %v2278_v3 }
  0xfc   : > { %2290 = vmatmul.msk.f32.gmra.mxu1 %vm544_vm2, %v1329_v12  ;;  %2316 = vmatmul.msk.f32.gmra.mxu2 %vm544_vm2, %v1515_v21 }
  0xfd   : > { %2342 = vmatmul.msk.f32.gmra.mxu3 %vm544_vm2, %v1697_v33  ;;  %2367 = vmatmul.msk.f32.vlgmr.msra.gmra.mxu0 %vm544_vm2, %v1878_v7  ;;  %v1263_v7 = vadd.f32 %v2659_v29, %v1255_v19 }
  0xff   : > { %vm1271_vm0 = vcmp.ge.f32.partialorder %v1263_v7, 0.0 }
 0x100   : > { %v1502_v49 = vpop.permute.xlu2 %1501 }
 0x101   : > { %v1846_v6 = vpop.permute.xlu1 %1845  ;;  %v1669_v31 = vpop.permute.xlu0 %1668  ;;  %v1519_v9 = vmul.f32 %v1502_v49, %v2966_v62 }
 0x102   : > { %v1879_v37 = vmul.f32 %v1846_v6, %v2908_v38  ;;  %v1698_v4 = vmul.f32 %v1669_v31, %v2773_v39  ;;  %v1880_v38 = vmul.f32 %v1851_v24, %v2929_v57  ;;  %v2356_v24 = vld [vmem:[%s2638_s16 + $0x92] sm:$0xff] }
 0x103   : > { %v1805_v28 = vmul.f32 %v2648_v26, %v2356_v24 }
 0x104   : > { %2291 = vmatmul.msk.f32.gmra.mxu1 %vm544_vm2, %v1330_v11  ;;  %2317 = vmatmul.msk.f32.gmra.mxu2 %vm544_vm2, %v1516_v14 }
 0x105   : > { %2343 = vmatmul.msk.f32.gmra.mxu3 %vm544_vm2, %v1698_v4  ;;  %2368 = vmatmul.msk.f32.gmra.mxu0 %vm544_vm2, %v1879_v37 }
 0x109   : > { %v1674_v36 = vpop.permute.xlu1 %1673  ;;  %v1492_v51 = vpop.permute.xlu0 %1491 }
 0x10a   : > { %v1699_v54 = vmul.f32 %v1674_v36, %v2802_v0  ;;  %v1517_v47 = vmul.f32 %v1492_v51, %v1469_v45  ;;  %v1700_v0 = vmul.f32 %v1679_v32, %v2701_v46  ;;  %v2304_v46 = vld [vmem:[%s2638_s16 + $0x90] sm:$0xff]  ;;  %v1279_v45 = vmul.f32 0.2, %v1263_v7  ;;  %s2377_s16 = sshll.u32 %s3217_s24, 6 }
 0x10b   : > { %v1441_v58 = vmul.f32 %v2648_v26, %v2304_v46  ;;  %v1813_v32 = vadd.f32 %v2659_v29, %v1805_v28  ;;  %s3132_s21 = scalar_lea.vmem %s3210_s6, %s2377_s16 }
 0x10c   : > { %2318 = vmatmul.msk.f32.gmra.mxu2 %vm544_vm2, %v1517_v47 }
 0x10d   : > { %2344 = vmatmul.msk.f32.gmra.mxu3 %vm544_vm2, %v1699_v54  ;;  %2369 = vmatmul.msk.f32.gmra.mxu0 %vm544_vm2, %v1880_v38  ;;  %v1287_v54 = vsel %vm1271_vm0, %v1263_v7, %v1279_v45  ;;  %v1829_v26 = vmul.f32 0.2, %v1813_v32  ;;  %vm1821_vm1 = vcmp.ge.f32.partialorder %v1813_v32, 0.0 }
 0x10e   : > { %v3057_v30 = vpop.f32.mrf.mxu3 }
 0x111   : > { %v1497_v39 = vpop.permute.xlu1 %1496  ;;  %v1306_v48 = vpop.permute.xlu0 %1305 }
 0x112   : > { %v1518_v23 = vmul.f32 %v1497_v39, %v2947_v16  ;;  %v1331_v18 = vmul.f32 %v1306_v48, %v2929_v57  ;;  %v1316_v57 = vpop.permute.xlu2 %1315 }
 0x113   : > { %v1333_v62 = vmul.f32 %v1316_v57, %v2968_v41 }
 0x114   : > { %2292 = vmatmul.msk.f32.gmra.mxu1 %vm544_vm2, %v1331_v18  ;;  %2319 = vmatmul.msk.f32.gmra.mxu2 %vm544_vm2, %v1518_v23  ;;  %v1837_v18 = vsel %vm1821_vm1, %v1813_v32, %v1829_v26 }
 0x115   : > { %2345 = vmatmul.msk.f32.gmra.mxu3 %vm544_vm2, %v1700_v0 }
 0x119   : > { %v1311_v50 = vpop.permute.xlu1 %1310  ;;  %v1856_v13 = vpop.permute.xlu0 %1855 }
 0x11a   : > { %v1332_v52 = vmul.f32 %v1311_v50, %v2949_v34  ;;  %v1881_v16 = vmul.f32 %v1856_v13, %v2949_v34  ;;  %v3040_v53 = vpop.f32.mrf.mxu1  ;;  %v1866_v35 = vpop.permute.xlu2 %1865 }
 0x11b   : > { %v1883_v17 = vmul.f32 %v1866_v35, %v2986_v61  ;;  %v3079_v31 = vpop.f32.mrf.mxu0 }
 0x11c   : > { %2293 = vmatmul.msk.f32.gmra.mxu1 %vm544_vm2, %v1332_v52  ;;  %2320 = vmatmul.msk.f32.gmra.mxu2 %vm544_vm2, %v1519_v9 }
 0x11d   : > { %2370 = vmatmul.msk.f32.gmra.mxu0 %vm544_vm2, %v1881_v16 }
 0x121   : > { %v1861_v25 = vpop.permute.xlu1 %1860  ;;  %v1684_v27 = vpop.permute.xlu0 %1683 }
 0x122   : > { %v1882_v5 = vmul.f32 %v1861_v25, %v2968_v41  ;;  %v1701_v34 = vmul.f32 %v1684_v27, %v2807_v2  ;;  %v3050_v42 = vpop.f32.mrf.mxu1  ;;  %v1449_v41 = vadd.f32 %v2659_v29, %v1441_v58  ;;  %v1631_v2 = vadd.f32 %v2659_v29, %v1623_v60  ;;  %v1694_v33 = vpop.permute.xlu2 %1693 }
 0x124   : > { %2294 = vmatmul.msk.f32.gmra.mxu1 %vm544_vm2, %v1333_v62  ;;  %2346 = vmatmul.msk.f32.gmra.mxu3 %vm544_vm2, %v1701_v34  ;;  %v1465_v22 = vmul.f32 0.2, %v1449_v41  ;;  %v1647_v21 = vmul.f32 0.2, %v1631_v2  ;;  %vm1457_vm14 = vcmp.ge.f32.partialorder %v1449_v41, 0.0  ;;  %vm1639_vm15 = vcmp.ge.f32.partialorder %v1631_v2, 0.0 }
 0x125   : > { %2371 = vmatmul.msk.f32.gmra.mxu0 %vm544_vm2, %v1882_v5 }
 0x126   : > { %v1473_v12 = vsel %vm1457_vm14, %v1449_v41, %v1465_v22  ;;  %v1655_v20 = vsel %vm1639_vm15, %v1631_v2, %v1647_v21 }
 0x127   : > { %v3059_v63 = vpop.f32.mrf.mxu2  ;;  %v1703_v4 = vmul.f32 %v1694_v33, %v1655_v20 }
 0x129   : > { %v1689_v59 = vpop.permute.xlu1 %1688  ;;  %v1507_v10 = vpop.permute.xlu0 %1506 }
 0x12a   : > { %v1702_v56 = vmul.f32 %v1689_v59, %v2996_v1  ;;  %v1520_v8 = vmul.f32 %v1507_v10, %v2984_v40  ;;  %v3068_v15 = vpop.f32.mrf.mxu1  ;;  %v1876_v23 = vpop.permute.xlu2 %1875 }
 0x12b   : > { %v1885_v29 = vmul.f32 %v1876_v23, %v1837_v18  ;;  %v659_v22 = vadd.f32 %v3068_v15, %v3064_v43 }
 0x12c   : > { %2321 = vmatmul.msk.f32.gmra.mxu2 %vm544_vm2, %v1520_v8  ;;  %2347 = vmatmul.msk.f32.gmra.mxu3 %vm544_vm2, %v1702_v56 }
 0x12d   : > { %2372 = vmatmul.msk.f32.gmra.mxu0 %vm544_vm2, %v1883_v17 }
 0x12f   : > { %v3075_v1 = vpop.f32.mrf.mxu2  ;;  %v611_v40 = vpop.f32.mrf.mxu3 }
 0x131   : > { %v1512_v44 = vpop.permute.xlu1 %1511  ;;  %v1321_v6 = vpop.permute.xlu0 %1320 }
 0x132   : > { %v1521_v14 = vmul.f32 %v1512_v44, %v1473_v12  ;;  %v1334_v11 = vmul.f32 %v1321_v6, %v2986_v61  ;;  %v661_v37 = vpop.f32.mrf.mxu1 }
 0x133   : > { %v662_v6 = vadd.f32 %v661_v37, %v3079_v31  ;;  %v3127_v31 = vld [vmem:[%s3209_s5] ss:$0 sm:$0xff] }
 0x134   : > { %2295 = vmatmul.msk.f32.gmra.mxu1 %vm544_vm2, %v1334_v11  ;;  %2322 = vmatmul.msk.f32.gmra.mxu2 %vm544_vm2, %v1521_v14 }
 0x135   : > { %2348 = vmatmul.msk.f32.gmra.mxu3 %vm544_vm2, %v1703_v4 }
 0x137   : > { %v832_v36 = vpop.f32.mrf.mxu2  ;;  %v1018_v51 = vpop.f32.mrf.mxu3 }
 0x138   : > { %v856_v12 = vadd.f32 %v832_v36, %v659_v22 }
 0x139   : > { %v1326_v47 = vpop.permute.xlu1 %1325  ;;  %v1871_v38 = vpop.permute.xlu0 %1870 }
 0x13a   : > { %v1335_v61 = vmul.f32 %v1326_v47, %v1287_v54  ;;  %v1884_v39 = vmul.f32 %v1871_v38, %v1287_v54  ;;  %v664_v48 = vpop.f32.mrf.mxu1  ;;  %v1200_v49 = vpop.f32.mrf.mxu0  ;;  %v1042_v20 = vadd.f32 %v1018_v51, %v856_v12 }
 0x13b   : > { %v665_v47 = vadd.f32 %v664_v48, %v3040_v53 }
 0x13c   : > { %2296 = vmatmul.msk.f32.gmra.mxu1 %vm544_vm2, %v1335_v61  ;;  %2373 = vmatmul.msk.f32.gmra.mxu0 %vm544_vm2, %v1884_v39  ;;  %v1224_v11 = vadd.f32 %v1200_v49, %v1042_v20 }
 0x13f   : > { %v835_v0 = vpop.f32.mrf.mxu2  ;;  %v1021_v50 = vpop.f32.mrf.mxu3 }
 0x140   : > { %v857_v4 = vadd.f32 %v835_v0, %v662_v6 }
 0x142   : > { %v3089_v13 = vpop.f32.mrf.mxu1  ;;  %v1203_v9 = vpop.f32.mrf.mxu0  ;;  %v1043_v45 = vadd.f32 %v1021_v50, %v857_v4 }
 0x144   : > { %2374 = vmatmul.msk.f32.gmra.mxu0 %vm544_vm2, %v1885_v29  ;;  %v1225_v37 = vadd.f32 %v1203_v9, %v1043_v45  ;;  %vm1976_vm2 = vcmask 64512  }
 0x147   : > { %v838_v52 = vpop.f32.mrf.mxu2  ;;  %v1024_v16 = vpop.f32.mrf.mxu3 }
 0x148   : > { %v858_v61 = vadd.f32 %v838_v52, %v665_v47 }
 0x14a   : > { %v3092_v57 = vpop.f32.mrf.mxu1  ;;  %v1206_v46 = vpop.f32.mrf.mxu0  ;;  %v1044_v26 = vadd.f32 %v1024_v16, %v858_v61 }
 0x14c   : > { %v1226_v9 = vadd.f32 %v1206_v46, %v1044_v26 }
 0x14f   : > { %v3094_v55 = vpop.f32.mrf.mxu2  ;;  %v3096_v25 = vpop.f32.mrf.mxu3 }
 0x152   : > { %v3098_v27 = vpop.f32.mrf.mxu1  ;;  %v3100_v62 = vpop.f32.mrf.mxu0 }
 0x157   : > { %v3102_v5 = vpop.f32.mrf.mxu2  ;;  %v3104_v34 = vpop.f32.mrf.mxu3 }
 0x15a   : > { %v676_v58 = vpop.f32.mrf.mxu1  ;;  %v3106_v60 = vpop.f32.mrf.mxu0 }
 0x15b   : > { %v677_v35 = vadd.f32 %v676_v58, %v3057_v30  ;;  %v668_v58 = vadd.f32 %v3089_v13, %v3050_v42 }
 0x15f   : > { %v3109_v41 = vpop.f32.mrf.mxu2  ;;  %v3111_v2 = vpop.f32.mrf.mxu3 }
 0x162   : > { %v679_v3 = vpop.f32.mrf.mxu1  ;;  %v3113_v59 = vpop.f32.mrf.mxu0 }
 0x163   : > { %v680_v10 = vadd.f32 %v679_v3, %v611_v40 }
 0x167   : > { %v850_v56 = vpop.f32.mrf.mxu2  ;;  %v1036_v8 = vpop.f32.mrf.mxu3 }
 0x168   : > { %v862_v17 = vadd.f32 %v850_v56, %v677_v35  ;;  %v859_v56 = vadd.f32 %v3094_v55, %v668_v58 }
 0x16a   : > { %v1048_v19 = vadd.f32 %v1036_v8, %v862_v17  ;;  %v1218_v21 = vpop.f32.mrf.mxu0  ;;  %v1045_v55 = vadd.f32 %v3096_v25, %v859_v56 }
 0x16c   : > { %v3117_v7 = vadd.f32 %v1218_v21, %v1048_v19  ;;  %v1227_v6 = vadd.f32 %v3100_v62, %v1045_v55  ;;  %v674_v62 = vadd.f32 %v3098_v27, %v3075_v1 }
 0x16f   : > { %v853_v30 = vpop.f32.mrf.mxu2  ;;  %v1039_v33 = vpop.f32.mrf.mxu3 }
 0x170   : > { %v863_v24 = vadd.f32 %v853_v30, %v680_v10 }
 0x171   : > { %v1382_v44 = vpop.f32.mrf.mxu1 }
 0x172   : > { %v1049_v40 = vadd.f32 %v1039_v33, %v863_v24  ;;  %v1221_v14 = vpop.f32.mrf.mxu0  ;;  %v1406_v43 = vadd.f32 %v1382_v44, %v1224_v11  ;;  %v671_v24 = vadd.f32 %v3092_v57, %v3059_v63 }
 0x174   : > { %v3120_v28 = vadd.f32 %v1221_v14, %v1049_v40  ;;  %v860_v40 = vadd.f32 %v3102_v5, %v671_v24 }
 0x176   : > { %v1046_v63 = vadd.f32 %v3104_v34, %v860_v40 }
 0x177   : > { %v1568_v15 = vpop.f32.mrf.mxu2 }
 0x178   : > { %v1592_v32 = vadd.f32 %v1568_v15, %v1406_v43  ;;  %v1750_v36 = vpop.f32.mrf.mxu3  ;;  %v1228_v5 = vadd.f32 %v3106_v60, %v1046_v63 }
 0x179   : > { %v1385_v54 = vpop.f32.mrf.mxu1 }
 0x17a   : > { %v1774_v51 = vadd.f32 %v1750_v36, %v1592_v32  ;;  %v1932_v38 = vpop.f32.mrf.mxu0  ;;  %v1407_v49 = vadd.f32 %v1385_v54, %v1225_v37  ;;  %v861_v54 = vadd.f32 %v3109_v41, %v674_v62 }
 0x17c   : > { %v1956_v39 = vadd.f32 %v1932_v38, %v1774_v51 }
 0x17e   : > { %v1968_v53 = vadd.f32 %v3127_v31, %v1956_v39 }
 0x17f   : > { %v1571_v48 = vpop.f32.mrf.mxu2 }
 0x180   : > { %1977 = vst.msk [vmem:[%s3132_s21] sm:$0xff] %vm1976_vm2, %v1968_v53  ;;  %v1593_v23 = vadd.f32 %v1571_v48, %v1407_v49  ;;  %v1753_v18 = vpop.f32.mrf.mxu3  ;;  %v2006_v35 = vmul.f32 %v1968_v53, %v1968_v53  ;;  %v1985_v8 = vsel %vm1976_vm2, %v1968_v53, 0.0  ;;  %v1047_v49 = vadd.f32 %v3111_v2, %v861_v54 }
 0x181   : > { %v1388_v29 = vpop.f32.mrf.mxu1 }
 0x182   : > { %v1775_v0 = vadd.f32 %v1753_v18, %v1593_v23  ;;  %v1935_v50 = vpop.f32.mrf.mxu0  ;;  %v1408_v3 = vadd.f32 %v1388_v29, %v1226_v9  ;;  %v2014_v42 = vsel %vm1976_vm2, %v2006_v35, 0.0  ;;  %v1229_v60 = vadd.f32 %v3113_v59, %v1047_v49 }
 0x184   : > { %v1957_v52 = vadd.f32 %v1935_v50, %v1775_v0 }
 0x186   : > { %v1969_v10 = vadd.f32 %v3127_v31, %v1957_v52 }
 0x187   : > { %v1574_v16 = vpop.f32.mrf.mxu2 }
 0x188   : > { %1978 = vst.msk [vmem:[%s3132_s21 + $0x8] sm:$0xff] %vm1976_vm2, %v1969_v10  ;;  %v1986_v17 = vsel %vm1976_vm2, %v1969_v10, 0.0  ;;  %v2007_v22 = vmul.f32 %v1969_v10, %v1969_v10  ;;  %v1594_v46 = vadd.f32 %v1574_v16, %v1408_v3  ;;  %v1756_v21 = vpop.f32.mrf.mxu3 }
 0x189   : > { %v1987_v19 = vadd.f32 %v1986_v17, %v1985_v8 }
 0x18a   : > { %v2015_v13 = vsel %vm1976_vm2, %v2007_v22, 0.0  ;;  %v1776_v12 = vadd.f32 %v1756_v21, %v1594_v46  ;;  %v1938_v33 = vpop.f32.mrf.mxu0 }
 0x18b   : > { %v2016_v30 = vadd.f32 %v2015_v13, %v2014_v42 }
 0x18c   : > { %v1958_v20 = vadd.f32 %v1938_v33, %v1776_v12 }
 0x18e   : > { %v1970_v44 = vadd.f32 %v3127_v31, %v1958_v20 }
 0x18f   : > { %v1577_v43 = vpop.f32.mrf.mxu2 }
 0x190   : > { %1979 = vst.msk [vmem:[%s3132_s21 + $0x10] sm:$0xff] %vm1976_vm2, %v1970_v44  ;;  %v1988_v14 = vsel %vm1976_vm2, %v1970_v44, 0.0  ;;  %v2008_v11 = vmul.f32 %v1970_v44, %v1970_v44  ;;  %v1759_v57 = vpop.f32.mrf.mxu3 }
 0x191   : > { %v1989_v4 = vadd.f32 %v1988_v14, %v1987_v19  ;;  %v1391_v15 = vpop.f32.mrf.mxu1 }
 0x192   : > { %v2017_v25 = vsel %vm1976_vm2, %v2008_v11, 0.0  ;;  %v1409_v45 = vadd.f32 %v1391_v15, %v1227_v6 }
 0x193   : > { %v2018_v32 = vadd.f32 %v2017_v25, %v2016_v30 }
 0x194   : > { %v1595_v36 = vadd.f32 %v1577_v43, %v1409_v45 }
 0x196   : > { %v1777_v51 = vadd.f32 %v1759_v57, %v1595_v36 }
 0x197   : > { %v1580_v61 = vpop.f32.mrf.mxu2 }
 0x198   : > { %v1762_v48 = vpop.f32.mrf.mxu3 }
 0x199   : > { %v1394_v47 = vpop.f32.mrf.mxu1 }
 0x19a   : > { %v1410_v38 = vadd.f32 %v1394_v47, %v1228_v5  ;;  %v1941_v37 = vpop.f32.mrf.mxu0 }
 0x19b   : > { %v1959_v39 = vadd.f32 %v1941_v37, %v1777_v51 }
 0x19c   : > { %v1596_v53 = vadd.f32 %v1580_v61, %v1410_v38 }
 0x19d   : > { %v1971_v34 = vadd.f32 %v3127_v31, %v1959_v39 }
 0x19e   : > { %v1778_v18 = vadd.f32 %v1762_v48, %v1596_v53 }
 0x19f   : > { %1980 = vst.msk [vmem:[%s3132_s21 + $0x18] sm:$0xff] %vm1976_vm2, %v1971_v34  ;;  %v1990_v1 = vsel %vm1976_vm2, %v1971_v34, 0.0  ;;  %v2009_v27 = vmul.f32 %v1971_v34, %v1971_v34  ;;  %v1583_v9 = vpop.f32.mrf.mxu2 }
 0x1a0   : > { %v1991_v41 = vadd.f32 %v1990_v1, %v1989_v4 }
 0x1a1   : > { %v2019_v26 = vsel %vm1976_vm2, %v2009_v27, 0.0  ;;  %v1397_v23 = vpop.f32.mrf.mxu1 }
 0x1a2   : > { %v2020_v0 = vadd.f32 %v2019_v26, %v2018_v32  ;;  %v1411_v50 = vadd.f32 %v1397_v23, %v1229_v60  ;;  %v1944_v2 = vpop.f32.mrf.mxu0 }
 0x1a3   : > { %v1960_v29 = vadd.f32 %v1944_v2, %v1778_v18 }
 0x1a4   : > { %v1597_v58 = vadd.f32 %v1583_v9, %v1411_v50 }
 0x1a5   : > { %v1972_v52 = vadd.f32 %v3127_v31, %v1960_v29 }
 0x1a7   : > { %1981 = vst.msk [vmem:[%s3132_s21 + $0x20] sm:$0xff] %vm1976_vm2, %v1972_v52  ;;  %v1992_v35 = vsel %vm1976_vm2, %v1972_v52, 0.0  ;;  %v2010_v3 = vmul.f32 %v1972_v52, %v1972_v52  ;;  %v1765_v59 = vpop.f32.mrf.mxu3 }
 0x1a8   : > { %v1993_v10 = vadd.f32 %v1992_v35, %v1991_v41  ;;  %v1779_v56 = vadd.f32 %v1765_v59, %v1597_v58 }
 0x1a9   : > { %v2021_v16 = vsel %vm1976_vm2, %v2010_v3, 0.0 }
 0x1aa   : > { %v2022_v8 = vadd.f32 %v2021_v16, %v2020_v0  ;;  %v1947_v17 = vpop.f32.mrf.mxu0 }
 0x1ab   : > { %v1961_v22 = vadd.f32 %v1947_v17, %v1779_v56 }
 0x1ad   : > { %v1973_v46 = vadd.f32 %v3127_v31, %v1961_v22 }
 0x1af   : > { %1982 = vst.msk [vmem:[%s3132_s21 + $0x28] sm:$0xff] %vm1976_vm2, %v1973_v46  ;;  %v1994_v19 = vsel %vm1976_vm2, %v1973_v46, 0.0  ;;  %v2011_v21 = vmul.f32 %v1973_v46, %v1973_v46  ;;  %v1586_v12 = vpop.f32.mrf.mxu2  ;;  %v1768_v24 = vpop.f32.mrf.mxu3 }
 0x1b0   : > { %v1995_v42 = vadd.f32 %v1994_v19, %v1993_v10 }
 0x1b1   : > { %v2023_v13 = vsel %vm1976_vm2, %v2011_v21, 0.0  ;;  %v1400_v30 = vpop.f32.mrf.mxu1 }
 0x1b2   : > { %v2024_v33 = vadd.f32 %v2023_v13, %v2022_v8  ;;  %v1412_v55 = vadd.f32 %v1400_v30, %v3117_v7 }
 0x1b4   : > { %v1598_v20 = vadd.f32 %v1586_v12, %v1412_v55 }
 0x1b6   : > { %v1780_v44 = vadd.f32 %v1768_v24, %v1598_v20 }
 0x1b7   : > { %v1589_v4 = vpop.f32.mrf.mxu2 }
 0x1b8   : > { %v1771_v32 = vpop.f32.mrf.mxu3 }
 0x1b9   : > { %v1403_v6 = vpop.f32.mrf.mxu1  ;;  %v1950_v40 = vpop.f32.mrf.mxu0 }
 0x1ba   : > { %v1413_v14 = vadd.f32 %v1403_v6, %v3120_v28  ;;  %v1962_v11 = vadd.f32 %v1950_v40, %v1780_v44 }
 0x1bc   : > { %v1599_v43 = vadd.f32 %v1589_v4, %v1413_v14  ;;  %v1974_v15 = vadd.f32 %v3127_v31, %v1962_v11 }
 0x1be   : > { %1983 = vst.msk [vmem:[%s3132_s21 + $0x30] sm:$0xff] %vm1976_vm2, %v1974_v15  ;;  %v1996_v25 = vsel %vm1976_vm2, %v1974_v15, 0.0  ;;  %v2012_v45 = vmul.f32 %v1974_v15, %v1974_v15  ;;  %v1781_v57 = vadd.f32 %v1771_v32, %v1599_v43 }
 0x1bf   : > { %v1997_v7 = vadd.f32 %v1996_v25, %v1995_v42 }
 0x1c0   : > { %v2025_v63 = vsel %vm1976_vm2, %v2012_v45, 0.0 }
 0x1c1   : > { %v2026_v36 = vadd.f32 %v2025_v63, %v2024_v33  ;;  %v1953_v62 = vpop.f32.mrf.mxu0 }
 0x1c2   : > { %v1963_v5 = vadd.f32 %v1953_v62, %v1781_v57 }
 0x1c4   : > { %v1975_v28 = vadd.f32 %v3127_v31, %v1963_v5 }
 0x1c6   : > { %1984 = vst.msk [vmem:[%s3132_s21 + $0x38] sm:$0xff] %vm1976_vm2, %v1975_v28  ;;  %v1998_v54 = vsel %vm1976_vm2, %v1975_v28, 0.0  ;;  %v2013_v47 = vmul.f32 %v1975_v28, %v1975_v28 }
 0x1c7   : > { %v1999_v51 = vadd.f32 %v1998_v54, %v1997_v7 }
 0x1c8   : > { %v2027_v38 = vsel %vm1976_vm2, %v2013_v47, 0.0 }
 0x1c9   : > { %v2000_v37 = vrot.slane %v1999_v51, 4  ;;  %v2028_v61 = vadd.f32 %v2027_v38, %v2026_v36 }
 0x1cb   : > { %v2001_v39 = vadd.f32 %v2000_v37, %v1999_v51  ;;  %v2029_v49 = vrot.slane %v2028_v61, 4 }
 0x1cd   : > { %v2002_v53 = vrot.slane %v2001_v39, 2  ;;  %v2030_v34 = vadd.f32 %v2029_v49, %v2028_v61 }
 0x1cf   : > { %v2003_v48 = vadd.f32 %v2002_v53, %v2001_v39  ;;  %v2031_v1 = vrot.slane %v2030_v34, 2 }
 0x1d1   : > { %v2004_v27 = vrot.slane %v2003_v48, 1  ;;  %v2032_v60 = vadd.f32 %v2031_v1, %v2030_v34 }
 0x1d3   : > { %v2033_v31 = vrot.slane %v2032_v60, 1  ;;  %v2005_v41 = vadd.f32 %v2004_v27, %v2003_v48 }
 0x1d5   : > { %v2034_v26 = vadd.f32 %v2033_v31, %v2032_v60 }
 0x1d7   : > { %v2036_v23 = vsel %vm2035_vm3, %v2005_v41, %v2034_v26 }
 0x1d8   : > { %2038 = vst.msk [vmem:[%s320_s29] sm:$0x3] %vm2037_vm4, %v2036_v23 }
 0x1d9 PF: > { %s18_s26 = sadd.s32 1, %s2435_s26   ;;  %s3212_s24 = smov %s2431_s25 }
 0x1da   : > { %p15_p5 = scmp.ge.s32.totalorder %s18_s26, 4   ;;  %s3213_s25 = smov %s3215_s27 }
 0x1dc   :  { %17 = sbr.rel (!%p15_p5) target bundleno = 2 (0x2), region = 100 }

</bundles_post_ra>
